<compile_context>
chip_gen: v7x
topology: tpu7x:2x2x1
jax: 0.10.0
libtpu: 0.0.40
codegen_flags: <defaults>
</compile_context>

<pallas_src>
import functools

import jax
import jax.numpy as jnp
from jax import lax
from jax.experimental import pallas as pl
from jax.experimental.pallas import tpu as pltpu


# --------------------------------------------------------------------------
# helpers
# --------------------------------------------------------------------------
def _ceil_to(x, m):
    return ((x + m - 1) // m) * m


def _pad2(x, rows, cols):
    r, c = x.shape
    if r == rows and c == cols:
        return x
    return jnp.pad(x, ((0, rows - r), (0, cols - c)))


def _pick_tile(dim, candidates=(512, 256, 128)):
    """Largest candidate tile that evenly divides `dim` (dim % 128 == 0)."""
    for t in candidates:
        if dim % t == 0:
            return t
    return 128


# --------------------------------------------------------------------------
# Generic tiled matmul (+ optional leaky_relu(0.2)) on pre-padded operands.
# --------------------------------------------------------------------------
def _mm_acc_kernel(a_ref, b_ref, o_ref, acc_ref, *, act):
    @pl.when(pl.program_id(2) == 0)
    def _():
        acc_ref[...] = jnp.zeros_like(acc_ref)

    acc_ref[...] += jnp.dot(
        a_ref[...], b_ref[...], preferred_element_type=jnp.float32
    )

    @pl.when(pl.program_id(2) == pl.num_programs(2) - 1)
    def _():
        out = acc_ref[...]
        if act:
            out = jnp.where(out > 0, out, 0.2 * out)
        o_ref[...] = out.astype(o_ref.dtype)


def _mm_single_kernel(a_ref, b_ref, o_ref, *, act):
    out = jnp.dot(a_ref[...], b_ref[...], preferred_element_type=jnp.float32)
    if act:
        out = jnp.where(out > 0, out, 0.2 * out)
    o_ref[...] = out.astype(o_ref.dtype)


def matmul_padded(a, b, act=False):
    """out = maybe_leaky_relu(a @ b); all dims must already be multiples of 128."""
    M, K = a.shape
    K2, N = b.shape
    assert K == K2
    assert M % 128 == 0 and K % 128 == 0 and N % 128 == 0
    tm, tn, tk = _pick_tile(M), _pick_tile(N), _pick_tile(K)
    nk = K // tk

    if nk == 1:
        # Scratch-free fast path: no accumulator round-trip needed.
        return pl.pallas_call(
            functools.partial(_mm_single_kernel, act=act),
            out_shape=jax.ShapeDtypeStruct((M, N), jnp.float32),
            grid=(M // tm, N // tn),
            in_specs=[
                pl.BlockSpec((tm, tk), lambda i, j: (i, 0)),
                pl.BlockSpec((tk, tn), lambda i, j: (0, j)),
            ],
            out_specs=pl.BlockSpec((tm, tn), lambda i, j: (i, j)),
            compiler_params=pltpu.CompilerParams(
                dimension_semantics=("parallel", "parallel")
            ),
        )(a, b)

    return pl.pallas_call(
        functools.partial(_mm_acc_kernel, act=act),
        out_shape=jax.ShapeDtypeStruct((M, N), jnp.float32),
        grid=(M // tm, N // tn, nk),
        in_specs=[
            pl.BlockSpec((tm, tk), lambda i, j, k: (i, k)),
            pl.BlockSpec((tk, tn), lambda i, j, k: (k, j)),
        ],
        out_specs=pl.BlockSpec((tm, tn), lambda i, j, k: (i, j)),
        scratch_shapes=[pltpu.VMEM((tm, tn), jnp.float32)],
        compiler_params=pltpu.CompilerParams(
            dimension_semantics=("parallel", "parallel", "arbitrary")
        ),
    )(a, b)


# --------------------------------------------------------------------------
# Fused a_hat = sigmoid(z_igae z_igae^T) + sigmoid(z_hat z_hat^T)
# (the N x N a_igae intermediate never touches HBM).
# --------------------------------------------------------------------------
def _ahat_kernel(ze_i_ref, ze_j_ref, zd_i_ref, zd_j_ref, o_ref):
    dn = (((1,), (1,)), ((), ()))
    s_e = lax.dot_general(
        ze_i_ref[...], ze_j_ref[...], dn, preferred_element_type=jnp.float32
    )
    s_d = lax.dot_general(
        zd_i_ref[...], zd_j_ref[...], dn, preferred_element_type=jnp.float32
    )
    o_ref[...] = (jax.nn.sigmoid(s_e) + jax.nn.sigmoid(s_d)).astype(o_ref.dtype)


def fused_a_hat_padded(z_igae, z_hat, vmem_budget=24 * 1024 * 1024):
    """z_igae (Np, de_p), z_hat (Np, dd_p) pre-padded; returns (Np, Np)."""
    Np, de_p = z_igae.shape
    Np2, dd_p = z_hat.shape
    assert Np == Np2 and Np % 128 == 0 and de_p % 128 == 0 and dd_p % 128 == 0

    # Pick node tile: largest in {512,256,128} dividing Np whose
    # double-buffered footprint fits the scoped-VMEM budget (z_hat's feature
    # dim can be large for scRNA inputs).
    t = 128
    for cand in (512, 256, 128):
        if Np % cand != 0:
            continue
        in_bytes = 2 * 2 * 4 * cand * (de_p + dd_p)   # i/j blocks, 2 buffers
        out_bytes = 2 * 4 * cand * cand
        if in_bytes + out_bytes <= vmem_budget:
            t = cand
            break

    return pl.pallas_call(
        _ahat_kernel,
        out_shape=jax.ShapeDtypeStruct((Np, Np), jnp.float32),
        grid=(Np // t, Np // t),
        in_specs=[
            pl.BlockSpec((t, de_p), lambda i, j: (i, 0)),
            pl.BlockSpec((t, de_p), lambda i, j: (j, 0)),
            pl.BlockSpec((t, dd_p), lambda i, j: (i, 0)),
            pl.BlockSpec((t, dd_p), lambda i, j: (j, 0)),
        ],
        out_specs=pl.BlockSpec((t, t), lambda i, j: (i, j)),
        compiler_params=pltpu.CompilerParams(
            dimension_semantics=("parallel", "parallel")
        ),
    )(z_igae, z_igae, z_hat, z_hat)


# --------------------------------------------------------------------------
# Fused Student-t soft assignment for the two latents of one modality.
# K is padded to 128 lanes (masked before row-normalization) so the output
# stores are lane-dense.
# --------------------------------------------------------------------------
def _q_pair_kernel(za_ref, zb_ref, c_ref, qa_ref, qb_ref, *, n_clusters):
    c = c_ref[...]                                  # (Kp, Dp)
    c2 = jnp.sum(c * c, axis=1)[None, :]            # (1, Kp)
    col = lax.broadcasted_iota(jnp.int32, c2.shape, 1)
    valid = col < n_clusters                        # mask out padded clusters
    dn = (((1,), (1,)), ((), ()))

    def soft_assign(z):
        z2 = jnp.sum(z * z, axis=1, keepdims=True)  # (tm, 1)
        zc = lax.dot_general(z, c, dn, preferred_element_type=jnp.float32)
        d2 = jnp.maximum(z2 + c2 - 2.0 * zc, 0.0)
        q = jnp.where(valid, 1.0 / (1.0 + d2), 0.0)
        return q / jnp.sum(q, axis=1, keepdims=True)

    qa_ref[...] = soft_assign(za_ref[...]).astype(qa_ref.dtype)
    qb_ref[...] = soft_assign(zb_ref[...]).astype(qb_ref.dtype)


def q_pair_padded(z_a, z_b, centers_p, n_clusters):
    """z_a/z_b (Np, Dp), centers_p (Kp, Dp) pre-padded; returns two (Np, Kp)."""
    Np, Dp = z_a.shape
    Kp, Dp2 = centers_p.shape
    assert Dp == Dp2 and Np % 128 == 0 and Dp % 128 == 0 and Kp % 128 == 0
    tm = _pick_tile(Np)

    qa, qb = pl.pallas_call(
        functools.partial(_q_pair_kernel, n_clusters=n_clusters),
        out_shape=(
            jax.ShapeDtypeStruct((Np, Kp), jnp.float32),
            jax.ShapeDtypeStruct((Np, Kp), jnp.float32),
        ),
        grid=(Np // tm,),
        in_specs=[
            pl.BlockSpec((tm, Dp), lambda i: (i, 0)),
            pl.BlockSpec((tm, Dp), lambda i: (i, 0)),
            pl.BlockSpec((Kp, Dp), lambda i: (0, 0)),
        ],
        out_specs=(
            pl.BlockSpec((tm, Kp), lambda i: (i, 0)),
            pl.BlockSpec((tm, Kp), lambda i: (i, 0)),
        ),
        compiler_params=pltpu.CompilerParams(dimension_semantics=("parallel",)),
    )(z_a, z_b, centers_p)

    return qa, qb


# --------------------------------------------------------------------------
# Model glue (parameter containers + forward orchestration; all heavy compute
# is inside the Pallas kernels above).
# --------------------------------------------------------------------------
def xavier_normal(key, shape):
    fan_in, fan_out = shape
    std = (2.0 / (fan_in + fan_out)) ** 0.5
    return std * jax.random.normal(key, shape, dtype=jnp.float32)


def init_gae_params(key, n_input, e1, e2, n_z):
    ks = jax.random.split(key, 6)
    return {
        "enc": [
            xavier_normal(ks[0], (n_input, e1)),
            xavier_normal(ks[1], (e1, e2)),
            xavier_normal(ks[2], (e2, n_z)),
        ],
        "dec": [
            xavier_normal(ks[3], (n_z, e2)),
            xavier_normal(ks[4], (e2, e1)),
            xavier_normal(ks[5], (e1, n_input)),
        ],
    }


def _pad_weight(w):
    return _pad2(w, _ceil_to(w.shape[0], 128), _ceil_to(w.shape[1], 128))


def gnn_layer_p(adj_p, x_p, w_p, act):
    support = matmul_padded(x_p, w_p, act=False)
    return matmul_padded(adj_p, support, act=act)


def igae_encoder_p(weights_p, x_p, adj_p):
    h = gnn_layer_p(adj_p, x_p, weights_p[0], act=True)
    h = gnn_layer_p(adj_p, h, weights_p[1], act=True)
    return gnn_layer_p(adj_p, h, weights_p[2], act=False)


def igae_decoder_p(weights_p, z_p, adj_p):
    h = gnn_layer_p(adj_p, z_p, weights_p[0], act=True)
    h = gnn_layer_p(adj_p, h, weights_p[1], act=True)
    return gnn_layer_p(adj_p, h, weights_p[2], act=True)


@functools.partial(jax.jit, static_argnames=("pretrain",))
def scmdcl_forward(params, x1, adj1, x2, adj2, pretrain=False):
    N = x1.shape[0]
    n_input1, n_input2 = x1.shape[1], x2.shape[1]
    n_clusters, n_z = params["centers1"].shape
    NP = _ceil_to(N, 128)

    # ---- pad node space ONCE (adj reused by 7 matmuls per modality) ----
    adj1_p = _pad2(adj1, NP, NP)
    adj2_p = _pad2(adj2, NP, NP)
    x1_p = _pad2(x1, NP, _ceil_to(n_input1, 128))
    x2_p = _pad2(x2, NP, _ceil_to(n_input2, 128))
    enc1_p = [_pad_weight(w) for w in params["gae1"]["enc"]]
    dec1_p = [_pad_weight(w) for w in params["gae1"]["dec"]]
    enc2_p = [_pad_weight(w) for w in params["gae2"]["enc"]]
    dec2_p = [_pad_weight(w) for w in params["gae2"]["dec"]]
    c1_p = _pad2(params["centers1"], _ceil_to(n_clusters, 128), _ceil_to(n_z, 128))
    c2_p = _pad2(params["centers2"], _ceil_to(n_clusters, 128), _ceil_to(n_z, 128))

    # ---- encoders (a_igae is NOT materialized; fused into a_hat below) ----
    z_igae1_p = igae_encoder_p(enc1_p, x1_p, adj1_p)
    z_igae2_p = igae_encoder_p(enc2_p, x2_p, adj2_p)
    # FIRND: z_tilde = adj @ z_igae
    z1_p = matmul_padded(adj1_p, z_igae1_p)
    z2_p = matmul_padded(adj2_p, z_igae2_p)
    # decoders
    z_hat1_p = igae_decoder_p(dec1_p, z1_p, adj1_p)
    z_hat2_p = igae_decoder_p(dec2_p, z2_p, adj2_p)
    # a_hat = a_igae + z_adj_hat, fused into one tiled N x N kernel
    a_hat1_p = fused_a_hat_padded(z_igae1_p, z_hat1_p)
    a_hat2_p = fused_a_hat_padded(z_igae2_p, z_hat2_p)

    if not pretrain:
        qa1, qb1 = q_pair_padded(z1_p, z_igae1_p, c1_p, n_clusters)
        qa2, qb2 = q_pair_padded(z2_p, z_igae2_p, c2_p, n_clusters)
        Q1 = [qa1[:N, :n_clusters], qb1[:N, :n_clusters]]
        Q2 = [qa2[:N, :n_clusters], qb2[:N, :n_clusters]]
    else:
        Q1, Q2 = None, None

    # ---- slice padding off the returned tensors ----
    z_hat1 = z_hat1_p[:N, :n_input1]
    z_hat2 = z_hat2_p[:N, :n_input2]
    a_hat1 = a_hat1_p[:N, :N]
    a_hat2 = a_hat2_p[:N, :N]
    z1 = z1_p[:N, :n_z]
    z2 = z2_p[:N, :n_z]
    cons = [z1, z2]
    return (z_hat1, a_hat1, z_hat2, a_hat2, Q1, Q2, z1, z2, cons)


# --------------------------------------------------------------------------
# Pure-JAX reference (for in-script numerical validation).
# --------------------------------------------------------------------------
def _ref_forward(params, x1, adj1, x2, adj2):
    def gnn(adj, x, w, act):
        out = adj @ (x @ w)
        return jnp.where(out > 0, out, 0.2 * out) if act else out

    def enc(p, x, adj):
        h = gnn(adj, x, p["enc"][0], True)
        h = gnn(adj, h, p["enc"][1], True)
        return gnn(adj, h, p["enc"][2], False)

    def dec(p, z, adj):
        h = gnn(adj, z, p["dec"][0], True)
        h = gnn(adj, h, p["dec"][1], True)
        return gnn(adj, h, p["dec"][2], True)

    def q(z, c):
        d2 = jnp.sum((z[:, None, :] - c[None, :, :]) ** 2, axis=-1)
        qq = 1.0 / (1.0 + d2)
        return qq / qq.sum(axis=1, keepdims=True)

    sig = jax.nn.sigmoid
    z_igae1 = enc(params["gae1"], x1, adj1)
    z_igae2 = enc(params["gae2"], x2, adj2)
    z1 = adj1 @ z_igae1
    z2 = adj2 @ z_igae2
    z_hat1 = dec(params["gae1"], z1, adj1)
    z_hat2 = dec(params["gae2"], z2, adj2)
    a_hat1 = sig(z_igae1 @ z_igae1.T) + sig(z_hat1 @ z_hat1.T)
    a_hat2 = sig(z_igae2 @ z_igae2.T) + sig(z_hat2 @ z_hat2.T)
    Q1 = [q(z1, params["centers1"]), q(z_igae1, params["centers1"])]
    Q2 = [q(z2, params["centers2"]), q(z_igae2, params["centers2"])]
    return z_hat1, a_hat1, z_hat2, a_hat2, Q1, Q2, z1, z2


# --------------------------------------------------------------------------
if __name__ == "__main__":
    N = 16              # number of graph nodes (cells)
    n_input1, n_input2 = 32, 24
    e1, e2, n_z = 32, 16, 8
    n_clusters = 4

    key = jax.random.PRNGKey(0)
    k_x1, k_x2, k_a1, k_a2, k_g1, k_g2, k_c1, k_c2 = jax.random.split(key, 8)

    # deterministic inputs
    x1 = jax.random.normal(k_x1, (N, n_input1), dtype=jnp.float32)
    x2 = jax.random.normal(k_x2, (N, n_input2), dtype=jnp.float32)

    def make_adj(k):
        a = jax.random.uniform(k, (N, N), dtype=jnp.float32)
        a = 0.5 * (a + a.T) + jnp.eye(N, dtype=jnp.float32)
        return a / jnp.sum(a, axis=1, keepdims=True)

    adj1 = make_adj(k_a1)
    adj2 = make_adj(k_a2)

    # deterministic parameters (synthetic, in-script init)
    params = {
        "gae1": init_gae_params(k_g1, n_input1, e1, e2, n_z),
        "gae2": init_gae_params(k_g2, n_input2, e1, e2, n_z),
        "centers1": xavier_normal(k_c1, (n_clusters, n_z)),
        "centers2": xavier_normal(k_c2, (n_clusters, n_z)),
    }

    out = scmdcl_forward(params, x1, adj1, x2, adj2, pretrain=False)
    out = jax.block_until_ready(out)
    (z_hat1, a_hat1, z_hat2, a_hat2, Q1, Q2, z1, z2, cons) = out

    # shape checks
    assert z_hat1.shape == (N, n_input1) and z_hat2.shape == (N, n_input2)
    assert a_hat1.shape == (N, N) and a_hat2.shape == (N, N)
    assert z1.shape == (N, n_z) and z2.shape == (N, n_z)
    assert Q1[0].shape == (N, n_clusters) and Q2[1].shape == (N, n_clusters)
    assert cons[0].shape == (N, n_z) and cons[1].shape == (N, n_z)

    # numerical check vs pure-JAX reference
    ref = _ref_forward(params, x1, adj1, x2, adj2)
    got = [z_hat1, a_hat1, z_hat2, a_hat2,
           Q1[0], Q1[1], Q2[0], Q2[1], z1, z2]
    exp = [ref[0], ref[1], ref[2], ref[3],
           ref[4][0], ref[4][1], ref[5][0], ref[5][1], ref[6], ref[7]]
    names = ["z_hat1", "a_hat1", "z_hat2", "a_hat2",
             "Q1[0]", "Q1[1]", "Q2[0]", "Q2[1]", "z1", "z2"]
    for nm, g, e in zip(names, got, exp):
        assert bool(jnp.allclose(g, e, atol=1e-4, rtol=1e-4)), nm

    print("KERNEL_OK")
</pallas_src>

<mosaic_0001>
module attributes {stable_mosaic.version = 11 : i64} {
  func.func @_mm_single_kernel(%arg0: i32, %arg1: i32, %arg2: memref<128x128xf32, #tpu.memory_space<vmem>>, %arg3: memref<128x128xf32, #tpu.memory_space<vmem>>, %arg4: memref<128x128xf32, #tpu.memory_space<vmem>>) attributes {dimension_semantics = [#tpu.dimension_semantics<parallel>, #tpu.dimension_semantics<parallel>], iteration_bounds = array<i64: 1, 1>, scalar_prefetch = 0 : i64, scratch_operands = 0 : i64, tpu.core_type = #tpu.core_type<tc>, window_params = [{transform_indices = @transform_0, window_bounds = array<i64: 128, 128>}, {transform_indices = @transform_1, window_bounds = array<i64: 128, 128>}, {transform_indices = @transform_2, window_bounds = array<i64: 128, 128>}]} {
    %c0 = arith.constant 0 : index
    %c0_0 = arith.constant 0 : index
    %0 = vector.load %arg2[%c0, %c0_0] : memref<128x128xf32, #tpu.memory_space<vmem>>, vector<128x128xf32>
    %c0_1 = arith.constant 0 : index
    %c0_2 = arith.constant 0 : index
    %1 = vector.load %arg3[%c0_1, %c0_2] : memref<128x128xf32, #tpu.memory_space<vmem>>, vector<128x128xf32>
    %cst = arith.constant dense<0.000000e+00> : vector<128x128xf32>
    %2 = tpu.matmul %0, %1, %cst {dimension_numbers = #tpu.dot_dimension_numbers<[1], [0], [0], [1], [0, 0, 1, 1], [], []>} : vector<128x128xf32>, vector<128x128xf32>, vector<128x128xf32> -> vector<128x128xf32>
    %c0_3 = arith.constant 0 : index
    %c0_4 = arith.constant 0 : index
    %3 = vector.load %arg4[%c0_3, %c0_4] : memref<128x128xf32, #tpu.memory_space<vmem>>, vector<128x128xf32>
    tpu.vector_store %arg4[%c0_3, %c0_4], %2 {strides = array<i32>} : memref<128x128xf32, #tpu.memory_space<vmem>>, vector<128x128xf32>,
    return
  }
  func.func @transform_0(%arg0: i32, %arg1: i32) -> (i32, i32) {
    %c0_i32 = arith.constant 0 : i32
    %c0_i32_0 = arith.constant 0 : i32
    return %arg0, %c0_i32 : i32, i32
  }
  func.func @transform_1(%arg0: i32, %arg1: i32) -> (i32, i32) {
    %c0_i32 = arith.constant 0 : i32
    %c0_i32_0 = arith.constant 0 : i32
    return %c0_i32, %arg1 : i32, i32
  }
  func.func @transform_2(%arg0: i32, %arg1: i32) -> (i32, i32) {
    %c0_i32 = arith.constant 0 : i32
    return %arg0, %arg1 : i32, i32
  }
}

module attributes {stable_mosaic.version = 11 : i64} {
  func.func @_mm_single_kernel(%arg0: i32, %arg1: i32, %arg2: memref<128x128xf32, #tpu.memory_space<vmem>>, %arg3: memref<128x128xf32, #tpu.memory_space<vmem>>, %arg4: memref<128x128xf32, #tpu.memory_space<vmem>>) attributes {dimension_semantics = [#tpu.dimension_semantics<parallel>, #tpu.dimension_semantics<parallel>], iteration_bounds = array<i64: 1, 1>, scalar_prefetch = 0 : i64, scratch_operands = 0 : i64, tpu.core_type = #tpu.core_type<tc>, window_params = [{transform_indices = @transform_0, window_bounds = array<i64: 128, 128>}, {transform_indices = @transform_1, window_bounds = array<i64: 128, 128>}, {transform_indices = @transform_2, window_bounds = array<i64: 128, 128>}]} {
    %c0 = arith.constant 0 : index
    %c0_0 = arith.constant 0 : index
    %0 = vector.load %arg2[%c0, %c0_0] : memref<128x128xf32, #tpu.memory_space<vmem>>, vector<128x128xf32>
    %c0_1 = arith.constant 0 : index
    %c0_2 = arith.constant 0 : index
    %1 = vector.load %arg3[%c0_1, %c0_2] : memref<128x128xf32, #tpu.memory_space<vmem>>, vector<128x128xf32>
    %cst = arith.constant dense<0.000000e+00> : vector<128x128xf32>
    %2 = tpu.matmul %0, %1, %cst {dimension_numbers = #tpu.dot_dimension_numbers<[1], [0], [0], [1], [0, 0, 1, 1], [], []>} : vector<128x128xf32>, vector<128x128xf32>, vector<128x128xf32> -> vector<128x128xf32>
    %cst_3 = arith.constant 0.000000e+00 : f32
    %3 = vector.broadcast %cst_3 : f32 to vector<128x128xf32>
    %4 = arith.cmpf ogt, %2, %3 : vector<128x128xf32>
    %cst_4 = arith.constant 2.000000e-01 : f32
    %5 = vector.broadcast %cst_4 : f32 to vector<128x128xf32>
    %6 = arith.mulf %5, %2 : vector<128x128xf32>
    %7 = arith.select %4, %2, %6 : vector<128x128xi1>, vector<128x128xf32>
    %c0_5 = arith.constant 0 : index
    %c0_6 = arith.constant 0 : index
    %8 = vector.load %arg4[%c0_5, %c0_6] : memref<128x128xf32, #tpu.memory_space<vmem>>, vector<128x128xf32>
    tpu.vector_store %arg4[%c0_5, %c0_6], %7 {strides = array<i32>} : memref<128x128xf32, #tpu.memory_space<vmem>>, vector<128x128xf32>,
    return
  }
  func.func @transform_0(%arg0: i32, %arg1: i32) -> (i32, i32) {
    %c0_i32 = arith.constant 0 : i32
    %c0_i32_0 = arith.constant 0 : i32
    return %arg0, %c0_i32 : i32, i32
  }
  func.func @transform_1(%arg0: i32, %arg1: i32) -> (i32, i32) {
    %c0_i32 = arith.constant 0 : i32
    %c0_i32_0 = arith.constant 0 : i32
    return %c0_i32, %arg1 : i32, i32
  }
  func.func @transform_2(%arg0: i32, %arg1: i32) -> (i32, i32) {
    %c0_i32 = arith.constant 0 : i32
    return %arg0, %arg1 : i32, i32
  }
}

module attributes {stable_mosaic.version = 11 : i64} {
  func.func @_ahat_kernel(%arg0: i32, %arg1: i32, %arg2: memref<128x128xf32, #tpu.memory_space<vmem>>, %arg3: memref<128x128xf32, #tpu.memory_space<vmem>>, %arg4: memref<128x128xf32, #tpu.memory_space<vmem>>, %arg5: memref<128x128xf32, #tpu.memory_space<vmem>>, %arg6: memref<128x128xf32, #tpu.memory_space<vmem>>) attributes {dimension_semantics = [#tpu.dimension_semantics<parallel>, #tpu.dimension_semantics<parallel>], iteration_bounds = array<i64: 1, 1>, scalar_prefetch = 0 : i64, scratch_operands = 0 : i64, tpu.core_type = #tpu.core_type<tc>, window_params = [{transform_indices = @transform_0, window_bounds = array<i64: 128, 128>}, {transform_indices = @transform_1, window_bounds = array<i64: 128, 128>}, {transform_indices = @transform_2, window_bounds = array<i64: 128, 128>}, {transform_indices = @transform_3, window_bounds = array<i64: 128, 128>}, {transform_indices = @transform_4, window_bounds = array<i64: 128, 128>}]} {
    %c0 = arith.constant 0 : index
    %c0_0 = arith.constant 0 : index
    %0 = vector.load %arg2[%c0, %c0_0] : memref<128x128xf32, #tpu.memory_space<vmem>>, vector<128x128xf32>
    %c0_1 = arith.constant 0 : index
    %c0_2 = arith.constant 0 : index
    %1 = vector.load %arg3[%c0_1, %c0_2] : memref<128x128xf32, #tpu.memory_space<vmem>>, vector<128x128xf32>
    %cst = arith.constant dense<0.000000e+00> : vector<128x128xf32>
    %2 = tpu.matmul %0, %1, %cst {dimension_numbers = #tpu.dot_dimension_numbers<[1], [1], [0], [0], [0, 0, 1, 0], [], []>} : vector<128x128xf32>, vector<128x128xf32>, vector<128x128xf32> -> vector<128x128xf32>
    %c0_3 = arith.constant 0 : index
    %c0_4 = arith.constant 0 : index
    %3 = vector.load %arg4[%c0_3, %c0_4] : memref<128x128xf32, #tpu.memory_space<vmem>>, vector<128x128xf32>
    %c0_5 = arith.constant 0 : index
    %c0_6 = arith.constant 0 : index
    %4 = vector.load %arg5[%c0_5, %c0_6] : memref<128x128xf32, #tpu.memory_space<vmem>>, vector<128x128xf32>
    %cst_7 = arith.constant dense<0.000000e+00> : vector<128x128xf32>
    %5 = tpu.matmul %3, %4, %cst_7 {dimension_numbers = #tpu.dot_dimension_numbers<[1], [1], [0], [0], [0, 0, 1, 0], [], []>} : vector<128x128xf32>, vector<128x128xf32>, vector<128x128xf32> -> vector<128x128xf32>
    %6 = arith.negf %2 : vector<128x128xf32>
    %7 = math.exp %6 : vector<128x128xf32>
    %cst_8 = arith.constant 1.000000e+00 : f32
    %8 = vector.broadcast %cst_8 : f32 to vector<128x128xf32>
    %9 = arith.addf %8, %7 : vector<128x128xf32>
    %10 = arith.divf %8, %9 : vector<128x128xf32>
    %11 = arith.negf %5 : vector<128x128xf32>
    %12 = math.exp %11 : vector<128x128xf32>
    %cst_9 = arith.constant 1.000000e+00 : f32
    %13 = vector.broadcast %cst_9 : f32 to vector<128x128xf32>
    %14 = arith.addf %13, %12 : vector<128x128xf32>
    %15 = arith.divf %13, %14 : vector<128x128xf32>
    %16 = arith.addf %10, %15 : vector<128x128xf32>
    %c0_10 = arith.constant 0 : index
    %c0_11 = arith.constant 0 : index
    %17 = vector.load %arg6[%c0_10, %c0_11] : memref<128x128xf32, #tpu.memory_space<vmem>>, vector<128x128xf32>
    tpu.vector_store %arg6[%c0_10, %c0_11], %16 {strides = array<i32>} : memref<128x128xf32, #tpu.memory_space<vmem>>, vector<128x128xf32>,
    return
  }
  func.func @transform_0(%arg0: i32, %arg1: i32) -> (i32, i32) {
    %c0_i32 = arith.constant 0 : i32
    %c0_i32_0 = arith.constant 0 : i32
    return %arg0, %c0_i32 : i32, i32
  }
  func.func @transform_1(%arg0: i32, %arg1: i32) -> (i32, i32) {
    %c0_i32 = arith.constant 0 : i32
    %c0_i32_0 = arith.constant 0 : i32
    return %arg1, %c0_i32 : i32, i32
  }
  func.func @transform_2(%arg0: i32, %arg1: i32) -> (i32, i32) {
    %c0_i32 = arith.constant 0 : i32
    %c0_i32_0 = arith.constant 0 : i32
    return %arg0, %c0_i32 : i32, i32
  }
  func.func @transform_3(%arg0: i32, %arg1: i32) -> (i32, i32) {
    %c0_i32 = arith.constant 0 : i32
    %c0_i32_0 = arith.constant 0 : i32
    return %arg1, %c0_i32 : i32, i32
  }
  func.func @transform_4(%arg0: i32, %arg1: i32) -> (i32, i32) {
    %c0_i32 = arith.constant 0 : i32
    return %arg0, %arg1 : i32, i32
  }
}

module attributes {stable_mosaic.version = 11 : i64} {
  func.func @_q_pair_kernel(%arg0: i32, %arg1: memref<128x128xf32, #tpu.memory_space<vmem>>, %arg2: memref<128x128xf32, #tpu.memory_space<vmem>>, %arg3: memref<128x128xf32, #tpu.memory_space<vmem>>, %arg4: memref<128x128xf32, #tpu.memory_space<vmem>>, %arg5: memref<128x128xf32, #tpu.memory_space<vmem>>) attributes {dimension_semantics = [#tpu.dimension_semantics<parallel>], iteration_bounds = array<i64: 1>, scalar_prefetch = 0 : i64, scratch_operands = 0 : i64, tpu.core_type = #tpu.core_type<tc>, window_params = [{transform_indices = @transform_0, window_bounds = array<i64: 128, 128>}, {transform_indices = @transform_1, window_bounds = array<i64: 128, 128>}, {pipeline_mode = #tpu.pipeline_mode<synchronous>, transform_indices = @transform_2, window_bounds = array<i64: 128, 128>}, {transform_indices = @transform_3, window_bounds = array<i64: 128, 128>}, {transform_indices = @transform_4, window_bounds = array<i64: 128, 128>}]} {
    %c0 = arith.constant 0 : index
    %c0_0 = arith.constant 0 : index
    %0 = vector.load %arg3[%c0, %c0_0] : memref<128x128xf32, #tpu.memory_space<vmem>>, vector<128x128xf32>
    %1 = arith.mulf %0, %0 : vector<128x128xf32>
    %cst = arith.constant dense<0.000000e+00> : vector<128xf32>
    %2 = vector.multi_reduction <add>, %1, %cst [1] : vector<128x128xf32> to vector<128xf32>
    %3 = vector.shape_cast %2 : vector<128xf32> to vector<1x128xf32>
    %4 = tpu.iota {dimensions = array<i32: 1>} : vector<1x128xi32>
    %c4_i32 = arith.constant 4 : i32
    %5 = vector.broadcast %c4_i32 : i32 to vector<1x128xi32>
    %6 = arith.cmpi slt, %4, %5 : vector<1x128xi32>
    %c0_1 = arith.constant 0 : index
    %c0_2 = arith.constant 0 : index
    %7 = vector.load %arg1[%c0_1, %c0_2] : memref<128x128xf32, #tpu.memory_space<vmem>>, vector<128x128xf32>
    %8 = arith.mulf %7, %7 : vector<128x128xf32>
    %cst_3 = arith.constant dense<0.000000e+00> : vector<128xf32>
    %9 = vector.multi_reduction <add>, %8, %cst_3 [1] : vector<128x128xf32> to vector<128xf32>
    %10 = vector.shape_cast %9 : vector<128xf32> to vector<128x1xf32>
    %cst_4 = arith.constant dense<0.000000e+00> : vector<128x128xf32>
    %11 = tpu.matmul %7, %0, %cst_4 {dimension_numbers = #tpu.dot_dimension_numbers<[1], [1], [0], [0], [0, 0, 1, 0], [], []>} : vector<128x128xf32>, vector<128x128xf32>, vector<128x128xf32> -> vector<128x128xf32>
    %12 = vector.broadcast %10 : vector<128x1xf32> to vector<128x128xf32>
    %13 = vector.broadcast %3 : vector<1x128xf32> to vector<128x128xf32>
    %14 = arith.addf %12, %13 : vector<128x128xf32>
    %cst_5 = arith.constant 2.000000e+00 : f32
    %15 = vector.broadcast %cst_5 : f32 to vector<128x128xf32>
    %16 = arith.mulf %15, %11 : vector<128x128xf32>
    %17 = arith.subf %14, %16 : vector<128x128xf32>
    %cst_6 = arith.constant 0.000000e+00 : f32
    %18 = vector.broadcast %cst_6 : f32 to vector<128x128xf32>
    %19 = arith.maximumf %17, %18 : vector<128x128xf32>
    %cst_7 = arith.constant 1.000000e+00 : f32
    %20 = vector.broadcast %cst_7 : f32 to vector<128x128xf32>
    %21 = arith.addf %20, %19 : vector<128x128xf32>
    %cst_8 = arith.constant 1.000000e+00 : f32
    %22 = vector.broadcast %cst_8 : f32 to vector<128x128xf32>
    %23 = arith.divf %22, %21 : vector<128x128xf32>
    %cst_9 = arith.constant 0.000000e+00 : f32
    %24 = vector.shape_cast %6 : vector<1x128xi1> to vector<1x128xi1>
    %25 = vector.broadcast %24 : vector<1x128xi1> to vector<128x128xi1>
    %26 = vector.broadcast %cst_9 : f32 to vector<128x128xf32>
    %27 = arith.select %25, %23, %26 : vector<128x128xi1>, vector<128x128xf32>
    %cst_10 = arith.constant dense<0.000000e+00> : vector<128xf32>
    %28 = vector.multi_reduction <add>, %27, %cst_10 [1] : vector<128x128xf32> to vector<128xf32>
    %29 = vector.shape_cast %28 : vector<128xf32> to vector<128x1xf32>
    %30 = vector.broadcast %29 : vector<128x1xf32> to vector<128x128xf32>
    %31 = arith.divf %27, %30 : vector<128x128xf32>
    %c0_11 = arith.constant 0 : index
    %c0_12 = arith.constant 0 : index
    %32 = vector.load %arg4[%c0_11, %c0_12] : memref<128x128xf32, #tpu.memory_space<vmem>>, vector<128x128xf32>
    tpu.vector_store %arg4[%c0_11, %c0_12], %31 {strides = array<i32>} : memref<128x128xf32, #tpu.memory_space<vmem>>, vector<128x128xf32>,
    %c0_13 = arith.constant 0 : index
    %c0_14 = arith.constant 0 : index
    %33 = vector.load %arg2[%c0_13, %c0_14] : memref<128x128xf32, #tpu.memory_space<vmem>>, vector<128x128xf32>
    %34 = arith.mulf %33, %33 : vector<128x128xf32>
    %cst_15 = arith.constant dense<0.000000e+00> : vector<128xf32>
    %35 = vector.multi_reduction <add>, %34, %cst_15 [1] : vector<128x128xf32> to vector<128xf32>
    %36 = vector.shape_cast %35 : vector<128xf32> to vector<128x1xf32>
    %cst_16 = arith.constant dense<0.000000e+00> : vector<128x128xf32>
    %37 = tpu.matmul %33, %0, %cst_16 {dimension_numbers = #tpu.dot_dimension_numbers<[1], [1], [0], [0], [0, 0, 1, 0], [], []>} : vector<128x128xf32>, vector<128x128xf32>, vector<128x128xf32> -> vector<128x128xf32>
    %38 = vector.broadcast %36 : vector<128x1xf32> to vector<128x128xf32>
    %39 = vector.broadcast %3 : vector<1x128xf32> to vector<128x128xf32>
    %40 = arith.addf %38, %39 : vector<128x128xf32>
    %cst_17 = arith.constant 2.000000e+00 : f32
    %41 = vector.broadcast %cst_17 : f32 to vector<128x128xf32>
    %42 = arith.mulf %41, %37 : vector<128x128xf32>
    %43 = arith.subf %40, %42 : vector<128x128xf32>
    %cst_18 = arith.constant 0.000000e+00 : f32
    %44 = vector.broadcast %cst_18 : f32 to vector<128x128xf32>
    %45 = arith.maximumf %43, %44 : vector<128x128xf32>
    %cst_19 = arith.constant 1.000000e+00 : f32
    %46 = vector.broadcast %cst_19 : f32 to vector<128x128xf32>
    %47 = arith.addf %46, %45 : vector<128x128xf32>
    %cst_20 = arith.constant 1.000000e+00 : f32
    %48 = vector.broadcast %cst_20 : f32 to vector<128x128xf32>
    %49 = arith.divf %48, %47 : vector<128x128xf32>
    %cst_21 = arith.constant 0.000000e+00 : f32
    %50 = vector.shape_cast %6 : vector<1x128xi1> to vector<1x128xi1>
    %51 = vector.broadcast %50 : vector<1x128xi1> to vector<128x128xi1>
    %52 = vector.broadcast %cst_21 : f32 to vector<128x128xf32>
    %53 = arith.select %51, %49, %52 : vector<128x128xi1>, vector<128x128xf32>
    %cst_22 = arith.constant dense<0.000000e+00> : vector<128xf32>
    %54 = vector.multi_reduction <add>, %53, %cst_22 [1] : vector<128x128xf32> to vector<128xf32>
    %55 = vector.shape_cast %54 : vector<128xf32> to vector<128x1xf32>
    %56 = vector.broadcast %55 : vector<128x1xf32> to vector<128x128xf32>
    %57 = arith.divf %53, %56 : vector<128x128xf32>
    %c0_23 = arith.constant 0 : index
    %c0_24 = arith.constant 0 : index
    %58 = vector.load %arg5[%c0_23, %c0_24] : memref<128x128xf32, #tpu.memory_space<vmem>>, vector<128x128xf32>
    tpu.vector_store %arg5[%c0_23, %c0_24], %57 {strides = array<i32>} : memref<128x128xf32, #tpu.memory_space<vmem>>, vector<128x128xf32>,
    return
  }
  func.func @transform_0(%arg0: i32) -> (i32, i32) {
    %c0_i32 = arith.constant 0 : i32
    %c0_i32_0 = arith.constant 0 : i32
    return %arg0, %c0_i32 : i32, i32
  }
  func.func @transform_1(%arg0: i32) -> (i32, i32) {
    %c0_i32 = arith.constant 0 : i32
    %c0_i32_0 = arith.constant 0 : i32
    return %arg0, %c0_i32 : i32, i32
  }
  func.func @transform_2(%arg0: i32) -> (i32, i32) {
    %c0_i32 = arith.constant 0 : i32
    %c0_i32_0 = arith.constant 0 : i32
    %c0_i32_1 = arith.constant 0 : i32
    return %c0_i32, %c0_i32_0 : i32, i32
  }
  func.func @transform_3(%arg0: i32) -> (i32, i32) {
    %c0_i32 = arith.constant 0 : i32
    %c0_i32_0 = arith.constant 0 : i32
    return %arg0, %c0_i32 : i32, i32
  }
  func.func @transform_4(%arg0: i32) -> (i32, i32) {
    %c0_i32 = arith.constant 0 : i32
    %c0_i32_0 = arith.constant 0 : i32
    return %arg0, %c0_i32 : i32, i32
  }
}

</mosaic_0001>

<bundles_post_ra>
// kernel: scmdcl_forward.30
= control target key start
LH: loop header
LB: loop body
LE: loop exit
PB: predicated region body
PF: predicated region fallthrough
CT: control target
= control target key end

     0   :  { %s503_s1 = inlined_call_operand.vmem [shape: f32[128,128], index: 1, kind: input, shape index: {}]   ;;  %s504_s0 = inlined_call_operand.vmem [shape: f32[128,128], index: 0, kind: input, shape index: {}]   ;;  %s505_s2 = inlined_call_operand.vmem [shape: f32[128,128], index: 2, kind: output, shape index: {}]  }
   0x1   :  { %v27_v0 = vld [vmem:[%s503_s1] sm:$0xff]  ;;  %v28_v1 = vld [vmem:[%s503_s1 + $0x8] sm:$0xff]  ;;  %v29_v2 = vld [vmem:[%s503_s1 + $0x10] sm:$0xff] }
   0x2   :  { %v296_v3 = vpack.c.bf16 %v28_v1, %v27_v0  ;;  %v30_v4 = vld [vmem:[%s503_s1 + $0x18] sm:$0xff]  ;;  %v31_v6 = vld [vmem:[%s503_s1 + $0x20] sm:$0xff]  ;;  %v32_v7 = vld [vmem:[%s503_s1 + $0x28] sm:$0xff] }
   0x3   :  { %v300_v5 = vpack.c.bf16 %v30_v4, %v29_v2  ;;  %v304_v8 = vpack.c.bf16 %v32_v7, %v31_v6  ;;  %v11_v9 = vld [vmem:[%s504_s0] sm:$0xff]  ;;  %v33_v11 = vld [vmem:[%s503_s1 + $0x30] sm:$0xff]  ;;  %v34_v12 = vld [vmem:[%s503_s1 + $0x38] sm:$0xff] }
   0x4   :  { %297 = vmatprep.subr.bf16.mxu0 %v296_v3  ;;  %328 = vmatprep.subr.bf16.mxu1 %v296_v3  ;;  %v19_v10 = vld [vmem:[%s504_s0 + $0x40] sm:$0xff]  ;;  %v308_v13 = vpack.c.bf16 %v34_v12, %v33_v11  ;;  %v36_v15 = vld [vmem:[%s503_s1 + $0x48] sm:$0xff]  ;;  %v37_v17 = vld [vmem:[%s503_s1 + $0x50] sm:$0xff] }
   0x5   :  { %299 = vmatpush3.bf16.msra.mxu0 %v296_v3  ;;  %336 = vmatpush3.bf16.msra.mxu1 %v296_v3  ;;  %v35_v14 = vld [vmem:[%s503_s1 + $0x40] sm:$0xff]  ;;  %v38_v18 = vld [vmem:[%s503_s1 + $0x58] sm:$0xff]  ;;  %v40_v21 = vld [vmem:[%s503_s1 + $0x68] sm:$0xff] }
   0x6   :  { %301 = vmatprep.subr.bf16.mxu0 %v300_v5  ;;  %329 = vmatprep.subr.bf16.mxu1 %v300_v5  ;;  %v312_v16 = vpack.c.bf16 %v36_v15, %v35_v14  ;;  %v316_v19 = vpack.c.bf16 %v38_v18, %v37_v17  ;;  %v39_v20 = vld [vmem:[%s503_s1 + $0x60] sm:$0xff]  ;;  %v41_v23 = vld [vmem:[%s503_s1 + $0x70] sm:$0xff]  ;;  %v42_v24 = vld [vmem:[%s503_s1 + $0x78] sm:$0xff] }
   0x7   :  { %272 = vmatprep.mubr.f32.mxu0 %v11_v9  ;;  %284 = vmatprep.mubr.f32.mxu1 %v19_v10  ;;  %v320_v22 = vpack.c.bf16 %v40_v21, %v39_v20  ;;  %v324_v25 = vpack.c.bf16 %v42_v24, %v41_v23  ;;  %v12_v26 = vld [vmem:[%s504_s0 + $0x8] sm:$0xff]  ;;  %v13_v28 = vld [vmem:[%s504_s0 + $0x10] sm:$0xff]  ;;  %v14_v30 = vld [vmem:[%s504_s0 + $0x18] sm:$0xff] }
   0x8   :  { %v20_v27 = vld [vmem:[%s504_s0 + $0x48] sm:$0xff]  ;;  %v21_v29 = vld [vmem:[%s504_s0 + $0x50] sm:$0xff]  ;;  %v22_v31 = vld [vmem:[%s504_s0 + $0x58] sm:$0xff] }
   0x9   :  { %303 = vmatpush3.bf16.msra.mxu0 %v300_v5  ;;  %337 = vmatpush3.bf16.msra.mxu1 %v300_v5  ;;  %v15_v32 = vld [vmem:[%s504_s0 + $0x20] sm:$0xff]  ;;  %v16_v34 = vld [vmem:[%s504_s0 + $0x28] sm:$0xff]  ;;  %v17_v36 = vld [vmem:[%s504_s0 + $0x30] sm:$0xff] }
   0xa   :  { %305 = vmatprep.subr.bf16.mxu0 %v304_v8  ;;  %330 = vmatprep.subr.bf16.mxu1 %v304_v8  ;;  %v23_v33 = vld [vmem:[%s504_s0 + $0x60] sm:$0xff]  ;;  %v24_v35 = vld [vmem:[%s504_s0 + $0x68] sm:$0xff]  ;;  %v25_v37 = vld [vmem:[%s504_s0 + $0x70] sm:$0xff] }
   0xb   :  { %v18_v38 = vld [vmem:[%s504_s0 + $0x38] sm:$0xff] }
   0xc   :  { %v26_v39 = vld [vmem:[%s504_s0 + $0x78] sm:$0xff] }
   0xd   :  { %307 = vmatpush3.bf16.msra.mxu0 %v304_v8  ;;  %338 = vmatpush3.bf16.msra.mxu1 %v304_v8 }
   0xe   :  { %309 = vmatprep.subr.bf16.mxu0 %v308_v13  ;;  %331 = vmatprep.subr.bf16.mxu1 %v308_v13 }
  0x11   :  { %311 = vmatpush3.bf16.msra.mxu0 %v308_v13  ;;  %339 = vmatpush3.bf16.msra.mxu1 %v308_v13 }
  0x12   :  { %313 = vmatprep.subr.bf16.mxu0 %v312_v16  ;;  %332 = vmatprep.subr.bf16.mxu1 %v312_v16 }
  0x15   :  { %315 = vmatpush3.bf16.msra.mxu0 %v312_v16  ;;  %340 = vmatpush3.bf16.msra.mxu1 %v312_v16 }
  0x16   :  { %317 = vmatprep.subr.bf16.mxu0 %v316_v19  ;;  %333 = vmatprep.subr.bf16.mxu1 %v316_v19 }
  0x19   :  { %319 = vmatpush3.bf16.msra.mxu0 %v316_v19  ;;  %341 = vmatpush3.bf16.msra.mxu1 %v316_v19 }
  0x1a   :  { %321 = vmatprep.subr.bf16.mxu0 %v320_v22  ;;  %334 = vmatprep.subr.bf16.mxu1 %v320_v22 }
  0x1d   :  { %323 = vmatpush3.bf16.msra.mxu0 %v320_v22  ;;  %342 = vmatpush3.bf16.msra.mxu1 %v320_v22 }
  0x1e   :  { %325 = vmatprep.subr.bf16.mxu0 %v324_v25  ;;  %335 = vmatprep.subr.bf16.mxu1 %v324_v25 }
  0x21   :  { %327 = vmatpush3.bf16.msra.mxu0 %v324_v25  ;;  %343 = vmatpush3.bf16.msra.mxu1 %v324_v25 }
  0x24   :  { %273 = vmatmul.mubr.f32.vlgmr.msra.gmra.mrb[0].mxu0 %v12_v26  ;;  %285 = vmatmul.mubr.f32.vlgmr.msra.gmra.mrb[0].mxu1 %v20_v27 }
  0x25   :  { %275 = vmatprep.mubr.f32.mxu0 %v13_v28  ;;  %287 = vmatprep.mubr.f32.mxu1 %v21_v29 }
  0x28   :  { %276 = vmatmul.mubr.f32.gmra.mrb[2].mxu0 %v14_v30  ;;  %288 = vmatmul.mubr.f32.gmra.mrb[2].mxu1 %v22_v31 }
  0x29   :  { %278 = vmatprep.mubr.f32.mxu0 %v15_v32  ;;  %290 = vmatprep.mubr.f32.mxu1 %v23_v33 }
  0x2c   :  { %279 = vmatmul.mubr.f32.gmra.mrb[4].mxu0 %v16_v34  ;;  %291 = vmatmul.mubr.f32.gmra.mrb[4].mxu1 %v24_v35 }
  0x2d   :  { %281 = vmatprep.mubr.f32.mxu0 %v17_v36  ;;  %293 = vmatprep.mubr.f32.mxu1 %v25_v37 }
  0x30   :  { %282 = vmatmul.mubr.f32.gmra.mrb[6].mxu0 %v18_v38  ;;  %294 = vmatmul.mubr.f32.gmra.mrb[6].mxu1 %v26_v39 }
  0xf7   :  { %v274_v40 = vpop.f32.mrb[0].mxu0  ;;  %v286_v41 = vpop.f32.mrb[0].mxu1 }
  0xf8   :  { %189 = vst [vmem:[%s505_s2 + $0x8] sm:$0xff] %v274_v40  ;;  %197 = vst [vmem:[%s505_s2 + $0x48] sm:$0xff] %v286_v41  ;;  %v109_v42 = vpop.f32.mrb[1].mxu0  ;;  %v149_v43 = vpop.f32.mrb[1].mxu1 }
  0xf9   :  { %188 = vst [vmem:[%s505_s2] sm:$0xff] %v109_v42  ;;  %196 = vst [vmem:[%s505_s2 + $0x40] sm:$0xff] %v149_v43 }
  0xfb   :  { %v277_v44 = vpop.f32.mrb[2].mxu0  ;;  %v289_v45 = vpop.f32.mrb[2].mxu1 }
  0xfc   :  { %191 = vst [vmem:[%s505_s2 + $0x18] sm:$0xff] %v277_v44  ;;  %199 = vst [vmem:[%s505_s2 + $0x58] sm:$0xff] %v289_v45  ;;  %v119_v46 = vpop.f32.mrb[3].mxu0  ;;  %v159_v47 = vpop.f32.mrb[3].mxu1 }
  0xfd   :  { %190 = vst [vmem:[%s505_s2 + $0x10] sm:$0xff] %v119_v46  ;;  %198 = vst [vmem:[%s505_s2 + $0x50] sm:$0xff] %v159_v47 }
  0xff   :  { %v280_v48 = vpop.f32.mrb[4].mxu0  ;;  %v292_v49 = vpop.f32.mrb[4].mxu1 }
 0x100   :  { %193 = vst [vmem:[%s505_s2 + $0x28] sm:$0xff] %v280_v48  ;;  %201 = vst [vmem:[%s505_s2 + $0x68] sm:$0xff] %v292_v49  ;;  %v129_v50 = vpop.f32.mrb[5].mxu0  ;;  %v169_v51 = vpop.f32.mrb[5].mxu1 }
 0x101   :  { %192 = vst [vmem:[%s505_s2 + $0x20] sm:$0xff] %v129_v50  ;;  %200 = vst [vmem:[%s505_s2 + $0x60] sm:$0xff] %v169_v51 }
 0x103   :  { %v283_v52 = vpop.f32.mrb[6].mxu0  ;;  %v295_v53 = vpop.f32.mrb[6].mxu1 }
 0x104   :  { %195 = vst [vmem:[%s505_s2 + $0x38] sm:$0xff] %v283_v52  ;;  %203 = vst [vmem:[%s505_s2 + $0x78] sm:$0xff] %v295_v53  ;;  %v139_v54 = vpop.f32.mrb[7].mxu0  ;;  %v179_v55 = vpop.f32.mrb[7].mxu1 }
 0x105   :  { %194 = vst [vmem:[%s505_s2 + $0x30] sm:$0xff] %v139_v54  ;;  %202 = vst [vmem:[%s505_s2 + $0x70] sm:$0xff] %v179_v55 }

// kernel: scmdcl_forward.31
= control target key start
LH: loop header
LB: loop body
LE: loop exit
PB: predicated region body
PF: predicated region fallthrough
CT: control target
= control target key end

     0   :  { %s551_s1 = inlined_call_operand.vmem [shape: f32[128,128], index: 1, kind: input, shape index: {}]   ;;  %s552_s0 = inlined_call_operand.vmem [shape: f32[128,128], index: 0, kind: input, shape index: {}]   ;;  %s553_s2 = inlined_call_operand.vmem [shape: f32[128,128], index: 2, kind: output, shape index: {}]  }
   0x1   :  { %v27_v0 = vld [vmem:[%s551_s1] sm:$0xff]  ;;  %v28_v1 = vld [vmem:[%s551_s1 + $0x8] sm:$0xff]  ;;  %v29_v2 = vld [vmem:[%s551_s1 + $0x10] sm:$0xff] }
   0x2   :  { %v344_v3 = vpack.c.bf16 %v28_v1, %v27_v0  ;;  %v30_v4 = vld [vmem:[%s551_s1 + $0x18] sm:$0xff]  ;;  %v31_v6 = vld [vmem:[%s551_s1 + $0x20] sm:$0xff]  ;;  %v32_v7 = vld [vmem:[%s551_s1 + $0x28] sm:$0xff] }
   0x3   :  { %v348_v5 = vpack.c.bf16 %v30_v4, %v29_v2  ;;  %v352_v8 = vpack.c.bf16 %v32_v7, %v31_v6  ;;  %v11_v9 = vld [vmem:[%s552_s0] sm:$0xff]  ;;  %v33_v11 = vld [vmem:[%s551_s1 + $0x30] sm:$0xff]  ;;  %v34_v12 = vld [vmem:[%s551_s1 + $0x38] sm:$0xff] }
   0x4   :  { %345 = vmatprep.subr.bf16.mxu0 %v344_v3  ;;  %376 = vmatprep.subr.bf16.mxu1 %v344_v3  ;;  %v19_v10 = vld [vmem:[%s552_s0 + $0x40] sm:$0xff]  ;;  %v356_v13 = vpack.c.bf16 %v34_v12, %v33_v11  ;;  %v36_v15 = vld [vmem:[%s551_s1 + $0x48] sm:$0xff]  ;;  %v37_v17 = vld [vmem:[%s551_s1 + $0x50] sm:$0xff] }
   0x5   :  { %347 = vmatpush3.bf16.msra.mxu0 %v344_v3  ;;  %384 = vmatpush3.bf16.msra.mxu1 %v344_v3  ;;  %v35_v14 = vld [vmem:[%s551_s1 + $0x40] sm:$0xff]  ;;  %v38_v18 = vld [vmem:[%s551_s1 + $0x58] sm:$0xff]  ;;  %v40_v21 = vld [vmem:[%s551_s1 + $0x68] sm:$0xff] }
   0x6   :  { %349 = vmatprep.subr.bf16.mxu0 %v348_v5  ;;  %377 = vmatprep.subr.bf16.mxu1 %v348_v5  ;;  %v360_v16 = vpack.c.bf16 %v36_v15, %v35_v14  ;;  %v364_v19 = vpack.c.bf16 %v38_v18, %v37_v17  ;;  %v39_v20 = vld [vmem:[%s551_s1 + $0x60] sm:$0xff]  ;;  %v41_v23 = vld [vmem:[%s551_s1 + $0x70] sm:$0xff]  ;;  %v42_v24 = vld [vmem:[%s551_s1 + $0x78] sm:$0xff] }
   0x7   :  { %320 = vmatprep.mubr.f32.mxu0 %v11_v9  ;;  %332 = vmatprep.mubr.f32.mxu1 %v19_v10  ;;  %v368_v22 = vpack.c.bf16 %v40_v21, %v39_v20  ;;  %v372_v25 = vpack.c.bf16 %v42_v24, %v41_v23  ;;  %v12_v26 = vld [vmem:[%s552_s0 + $0x8] sm:$0xff]  ;;  %v13_v28 = vld [vmem:[%s552_s0 + $0x10] sm:$0xff]  ;;  %v14_v30 = vld [vmem:[%s552_s0 + $0x18] sm:$0xff] }
   0x8   :  { %v20_v27 = vld [vmem:[%s552_s0 + $0x48] sm:$0xff]  ;;  %v21_v29 = vld [vmem:[%s552_s0 + $0x50] sm:$0xff]  ;;  %v22_v31 = vld [vmem:[%s552_s0 + $0x58] sm:$0xff] }
   0x9   :  { %351 = vmatpush3.bf16.msra.mxu0 %v348_v5  ;;  %385 = vmatpush3.bf16.msra.mxu1 %v348_v5  ;;  %v15_v32 = vld [vmem:[%s552_s0 + $0x20] sm:$0xff]  ;;  %v16_v34 = vld [vmem:[%s552_s0 + $0x28] sm:$0xff]  ;;  %v17_v36 = vld [vmem:[%s552_s0 + $0x30] sm:$0xff] }
   0xa   :  { %353 = vmatprep.subr.bf16.mxu0 %v352_v8  ;;  %378 = vmatprep.subr.bf16.mxu1 %v352_v8  ;;  %v23_v33 = vld [vmem:[%s552_s0 + $0x60] sm:$0xff]  ;;  %v24_v35 = vld [vmem:[%s552_s0 + $0x68] sm:$0xff]  ;;  %v25_v37 = vld [vmem:[%s552_s0 + $0x70] sm:$0xff] }
   0xb   :  { %v18_v38 = vld [vmem:[%s552_s0 + $0x38] sm:$0xff] }
   0xc   :  { %v26_v39 = vld [vmem:[%s552_s0 + $0x78] sm:$0xff] }
   0xd   :  { %355 = vmatpush3.bf16.msra.mxu0 %v352_v8  ;;  %386 = vmatpush3.bf16.msra.mxu1 %v352_v8 }
   0xe   :  { %357 = vmatprep.subr.bf16.mxu0 %v356_v13  ;;  %379 = vmatprep.subr.bf16.mxu1 %v356_v13 }
  0x11   :  { %359 = vmatpush3.bf16.msra.mxu0 %v356_v13  ;;  %387 = vmatpush3.bf16.msra.mxu1 %v356_v13 }
  0x12   :  { %361 = vmatprep.subr.bf16.mxu0 %v360_v16  ;;  %380 = vmatprep.subr.bf16.mxu1 %v360_v16 }
  0x15   :  { %363 = vmatpush3.bf16.msra.mxu0 %v360_v16  ;;  %388 = vmatpush3.bf16.msra.mxu1 %v360_v16 }
  0x16   :  { %365 = vmatprep.subr.bf16.mxu0 %v364_v19  ;;  %381 = vmatprep.subr.bf16.mxu1 %v364_v19 }
  0x19   :  { %367 = vmatpush3.bf16.msra.mxu0 %v364_v19  ;;  %389 = vmatpush3.bf16.msra.mxu1 %v364_v19 }
  0x1a   :  { %369 = vmatprep.subr.bf16.mxu0 %v368_v22  ;;  %382 = vmatprep.subr.bf16.mxu1 %v368_v22 }
  0x1d   :  { %371 = vmatpush3.bf16.msra.mxu0 %v368_v22  ;;  %390 = vmatpush3.bf16.msra.mxu1 %v368_v22 }
  0x1e   :  { %373 = vmatprep.subr.bf16.mxu0 %v372_v25  ;;  %383 = vmatprep.subr.bf16.mxu1 %v372_v25 }
  0x21   :  { %375 = vmatpush3.bf16.msra.mxu0 %v372_v25  ;;  %391 = vmatpush3.bf16.msra.mxu1 %v372_v25 }
  0x24   :  { %321 = vmatmul.mubr.f32.vlgmr.msra.gmra.mrb[0].mxu0 %v12_v26  ;;  %333 = vmatmul.mubr.f32.vlgmr.msra.gmra.mrb[0].mxu1 %v20_v27 }
  0x25   :  { %323 = vmatprep.mubr.f32.mxu0 %v13_v28  ;;  %335 = vmatprep.mubr.f32.mxu1 %v21_v29 }
  0x28   :  { %324 = vmatmul.mubr.f32.gmra.mrb[2].mxu0 %v14_v30  ;;  %336 = vmatmul.mubr.f32.gmra.mrb[2].mxu1 %v22_v31 }
  0x29   :  { %326 = vmatprep.mubr.f32.mxu0 %v15_v32  ;;  %338 = vmatprep.mubr.f32.mxu1 %v23_v33 }
  0x2c   :  { %327 = vmatmul.mubr.f32.gmra.mrb[4].mxu0 %v16_v34  ;;  %339 = vmatmul.mubr.f32.gmra.mrb[4].mxu1 %v24_v35 }
  0x2d   :  { %329 = vmatprep.mubr.f32.mxu0 %v17_v36  ;;  %341 = vmatprep.mubr.f32.mxu1 %v25_v37 }
  0x30   :  { %330 = vmatmul.mubr.f32.gmra.mrb[6].mxu0 %v18_v38  ;;  %342 = vmatmul.mubr.f32.gmra.mrb[6].mxu1 %v26_v39 }
  0xf7   :  { %v322_v40 = vpop.f32.mrb[0].mxu0  ;;  %v334_v41 = vpop.f32.mrb[0].mxu1 }
  0xf8   :  { %vm189_vm0 = vcmp.gt.f32.partialorder %v322_v40, 0.0  ;;  %v205_v42 = vmul.f32 0.2, %v322_v40  ;;  %vm197_vm1 = vcmp.gt.f32.partialorder %v334_v41, 0.0  ;;  %v213_v43 = vmul.f32 0.2, %v334_v41 }
  0xf9   :  { %v109_v44 = vpop.f32.mrb[1].mxu0  ;;  %v149_v45 = vpop.f32.mrb[1].mxu1 }
  0xfa   :  { %v221_v46 = vsel %vm189_vm0, %v322_v40, %v205_v42  ;;  %v229_v47 = vsel %vm197_vm1, %v334_v41, %v213_v43  ;;  %vm188_vm2 = vcmp.gt.f32.partialorder %v109_v44, 0.0  ;;  %v204_v48 = vmul.f32 0.2, %v109_v44 }
  0xfb   :  { %237 = vst [vmem:[%s553_s2 + $0x8] sm:$0xff] %v221_v46  ;;  %245 = vst [vmem:[%s553_s2 + $0x48] sm:$0xff] %v229_v47  ;;  %vm196_vm3 = vcmp.gt.f32.partialorder %v149_v45, 0.0  ;;  %v212_v49 = vmul.f32 0.2, %v149_v45  ;;  %v325_v50 = vpop.f32.mrb[2].mxu0 }
  0xfc   :  { %v337_v51 = vpop.f32.mrb[2].mxu1  ;;  %v220_v52 = vsel %vm188_vm2, %v109_v44, %v204_v48  ;;  %vm191_vm4 = vcmp.gt.f32.partialorder %v325_v50, 0.0  ;;  %v207_v53 = vmul.f32 0.2, %v325_v50  ;;  %v119_v54 = vpop.f32.mrb[3].mxu0 }
  0xfd   :  { %vm199_vm5 = vcmp.gt.f32.partialorder %v337_v51, 0.0  ;;  %v159_v55 = vpop.f32.mrb[3].mxu1  ;;  %236 = vst [vmem:[%s553_s2] sm:$0xff] %v220_v52  ;;  %v228_v56 = vsel %vm196_vm3, %v149_v45, %v212_v49  ;;  %v215_v57 = vmul.f32 0.2, %v337_v51  ;;  %vm190_vm6 = vcmp.gt.f32.partialorder %v119_v54, 0.0 }
  0xfe   :  { %v206_v58 = vmul.f32 0.2, %v119_v54  ;;  %244 = vst [vmem:[%s553_s2 + $0x40] sm:$0xff] %v228_v56  ;;  %v223_v59 = vsel %vm191_vm4, %v325_v50, %v207_v53  ;;  %vm198_vm7 = vcmp.gt.f32.partialorder %v159_v55, 0.0  ;;  %v214_v60 = vmul.f32 0.2, %v159_v55 }
  0xff   :  { %239 = vst [vmem:[%s553_s2 + $0x18] sm:$0xff] %v223_v59  ;;  %v231_v61 = vsel %vm199_vm5, %v337_v51, %v215_v57  ;;  %v328_v63 = vpop.f32.mrb[4].mxu0  ;;  %v340_v0 = vpop.f32.mrb[4].mxu1 }
 0x100   :  { %v222_v62 = vsel %vm190_vm6, %v119_v54, %v206_v58  ;;  %247 = vst [vmem:[%s553_s2 + $0x58] sm:$0xff] %v231_v61  ;;  %v230_v1 = vsel %vm198_vm7, %v159_v55, %v214_v60  ;;  %vm193_vm8 = vcmp.gt.f32.partialorder %v328_v63, 0.0  ;;  %v209_v2 = vmul.f32 0.2, %v328_v63  ;;  %v129_v3 = vpop.f32.mrb[5].mxu0  ;;  %v169_v4 = vpop.f32.mrb[5].mxu1 }
 0x101   :  { %238 = vst [vmem:[%s553_s2 + $0x10] sm:$0xff] %v222_v62  ;;  %vm201_vm9 = vcmp.gt.f32.partialorder %v340_v0, 0.0  ;;  %246 = vst [vmem:[%s553_s2 + $0x50] sm:$0xff] %v230_v1  ;;  %v217_v5 = vmul.f32 0.2, %v340_v0  ;;  %vm192_vm10 = vcmp.gt.f32.partialorder %v129_v3, 0.0 }
 0x102   :  { %v208_v6 = vmul.f32 0.2, %v129_v3  ;;  %vm200_vm11 = vcmp.gt.f32.partialorder %v169_v4, 0.0  ;;  %v225_v7 = vsel %vm193_vm8, %v328_v63, %v209_v2  ;;  %v216_v8 = vmul.f32 0.2, %v169_v4 }
 0x103   :  { %241 = vst [vmem:[%s553_s2 + $0x28] sm:$0xff] %v225_v7  ;;  %v233_v9 = vsel %vm201_vm9, %v340_v0, %v217_v5  ;;  %v331_v11 = vpop.f32.mrb[6].mxu0  ;;  %v343_v12 = vpop.f32.mrb[6].mxu1 }
 0x104   :  { %v224_v10 = vsel %vm192_vm10, %v129_v3, %v208_v6  ;;  %249 = vst [vmem:[%s553_s2 + $0x68] sm:$0xff] %v233_v9  ;;  %v232_v13 = vsel %vm200_vm11, %v169_v4, %v216_v8  ;;  %vm195_vm12 = vcmp.gt.f32.partialorder %v331_v11, 0.0  ;;  %v211_v14 = vmul.f32 0.2, %v331_v11  ;;  %v139_v15 = vpop.f32.mrb[7].mxu0  ;;  %v179_v16 = vpop.f32.mrb[7].mxu1 }
 0x105   :  { %240 = vst [vmem:[%s553_s2 + $0x20] sm:$0xff] %v224_v10  ;;  %vm203_vm13 = vcmp.gt.f32.partialorder %v343_v12, 0.0  ;;  %248 = vst [vmem:[%s553_s2 + $0x60] sm:$0xff] %v232_v13  ;;  %v219_v17 = vmul.f32 0.2, %v343_v12  ;;  %vm194_vm14 = vcmp.gt.f32.partialorder %v139_v15, 0.0 }
 0x106   :  { %v210_v18 = vmul.f32 0.2, %v139_v15  ;;  %vm202_vm15 = vcmp.gt.f32.partialorder %v179_v16, 0.0  ;;  %v227_v19 = vsel %vm195_vm12, %v331_v11, %v211_v14  ;;  %v218_v20 = vmul.f32 0.2, %v179_v16 }
 0x107   :  { %243 = vst [vmem:[%s553_s2 + $0x38] sm:$0xff] %v227_v19  ;;  %v235_v21 = vsel %vm203_vm13, %v343_v12, %v219_v17 }
 0x108   :  { %v226_v22 = vsel %vm194_vm14, %v139_v15, %v210_v18  ;;  %251 = vst [vmem:[%s553_s2 + $0x78] sm:$0xff] %v235_v21  ;;  %v234_v23 = vsel %vm202_vm15, %v179_v16, %v218_v20 }
 0x109   :  { %242 = vst [vmem:[%s553_s2 + $0x30] sm:$0xff] %v226_v22  ;;  %250 = vst [vmem:[%s553_s2 + $0x70] sm:$0xff] %v234_v23 }

// kernel: scmdcl_forward.56
= control target key start
LH: loop header
LB: loop body
LE: loop exit
PB: predicated region body
PF: predicated region fallthrough
CT: control target
= control target key end

     0   :  { %s1282_s1 = inlined_call_operand.vmem [shape: f32[128,128], index: 1, kind: input, shape index: {}, may-alias: {0,1}]   ;;  %s1283_s3 = inlined_call_operand.vmem [shape: f32[128,128], index: 3, kind: input, shape index: {}, may-alias: {2,3}]   ;;  %s1284_s0 = inlined_call_operand.vmem [shape: f32[128,128], index: 0, kind: input, shape index: {}, may-alias: {0,1}]   ;;  %s1285_s2 = inlined_call_operand.vmem [shape: f32[128,128], index: 2, kind: input, shape index: {}, may-alias: {2,3}]   ;;  %s1286_s4 = inlined_call_operand.vmem [shape: f32[128,128], index: 4, kind: output, shape index: {}]  }
   0x1   :  { %v33_v0 = vld [vmem:[%s1282_s1] sm:$0xff]  ;;  %v34_v1 = vld [vmem:[%s1282_s1 + $0x8] sm:$0xff]  ;;  %v35_v5 = vld [vmem:[%s1282_s1 + $0x10] sm:$0xff] }
   0x2   :  { %v210_v2 = vld [vmem:[%s1283_s3] sm:$0xff]  ;;  %v807_v3 = vpack.c.bf16 %v34_v1, %v33_v0  ;;  %v211_v4 = vld [vmem:[%s1283_s3 + $0x8] sm:$0xff]  ;;  %v36_v6 = vld [vmem:[%s1282_s1 + $0x18] sm:$0xff] }
   0x3   :  { %v839_v7 = vpack.c.bf16 %v211_v4, %v210_v2  ;;  %v811_v8 = vpack.c.bf16 %v36_v6, %v35_v5  ;;  %v212_v9 = vld [vmem:[%s1283_s3 + $0x10] sm:$0xff]  ;;  %v213_v10 = vld [vmem:[%s1283_s3 + $0x18] sm:$0xff]  ;;  %v37_v12 = vld [vmem:[%s1282_s1 + $0x20] sm:$0xff] }
   0x4   :  { %808 = vmatprep.subr.bf16.mxu0 %v807_v3  ;;  %v843_v11 = vpack.c.bf16 %v213_v10, %v212_v9  ;;  %v38_v13 = vld [vmem:[%s1282_s1 + $0x28] sm:$0xff]  ;;  %v214_v14 = vld [vmem:[%s1283_s3 + $0x20] sm:$0xff]  ;;  %v39_v20 = vld [vmem:[%s1282_s1 + $0x30] sm:$0xff] }
   0x5   :  { %840 = vmatprep.subr.bf16.mxu1 %v839_v7  ;;  %810 = vmatpush3.bf16.xpose.msra.mxu0 %v807_v3  ;;  %v215_v15 = vld [vmem:[%s1283_s3 + $0x28] sm:$0xff]  ;;  %v815_v16 = vpack.c.bf16 %v38_v13, %v37_v12  ;;  %v17_v18 = vld [vmem:[%s1284_s0] sm:$0xff]  ;;  %v40_v21 = vld [vmem:[%s1282_s1 + $0x38] sm:$0xff] }
   0x6   :  { %842 = vmatpush3.bf16.xpose.msra.mxu1 %v839_v7  ;;  %812 = vmatprep.subr.bf16.mxu0 %v811_v8  ;;  %v847_v17 = vpack.c.bf16 %v215_v15, %v214_v14  ;;  %v194_v19 = vld [vmem:[%s1285_s2] sm:$0xff]  ;;  %v216_v22 = vld [vmem:[%s1283_s3 + $0x30] sm:$0xff]  ;;  %v217_v23 = vld [vmem:[%s1283_s3 + $0x38] sm:$0xff]  ;;  %v819_v24 = vpack.c.bf16 %v40_v21, %v39_v20 }
   0x7   :  { %844 = vmatprep.subr.bf16.mxu1 %v843_v11  ;;  %727 = vmatprep.mubr.f32.mxu0 %v17_v18  ;;  %v851_v25 = vpack.c.bf16 %v217_v23, %v216_v22  ;;  %v41_v26 = vld [vmem:[%s1282_s1 + $0x40] sm:$0xff]  ;;  %v42_v27 = vld [vmem:[%s1282_s1 + $0x48] sm:$0xff]  ;;  %v43_v32 = vld [vmem:[%s1282_s1 + $0x50] sm:$0xff] }
   0x8   :  { %783 = vmatprep.mubr.f32.mxu1 %v194_v19  ;;  %v218_v28 = vld [vmem:[%s1283_s3 + $0x40] sm:$0xff]  ;;  %v219_v29 = vld [vmem:[%s1283_s3 + $0x48] sm:$0xff]  ;;  %v823_v30 = vpack.c.bf16 %v42_v27, %v41_v26  ;;  %v44_v33 = vld [vmem:[%s1282_s1 + $0x58] sm:$0xff] }
   0x9   :  { %v855_v31 = vpack.c.bf16 %v219_v29, %v218_v28  ;;  %v220_v34 = vld [vmem:[%s1283_s3 + $0x50] sm:$0xff]  ;;  %v221_v35 = vld [vmem:[%s1283_s3 + $0x58] sm:$0xff]  ;;  %v827_v36 = vpack.c.bf16 %v44_v33, %v43_v32  ;;  %v45_v38 = vld [vmem:[%s1282_s1 + $0x60] sm:$0xff] }
   0xa   :  { %v859_v37 = vpack.c.bf16 %v221_v35, %v220_v34  ;;  %v46_v39 = vld [vmem:[%s1282_s1 + $0x68] sm:$0xff]  ;;  %v222_v40 = vld [vmem:[%s1283_s3 + $0x60] sm:$0xff]  ;;  %v47_v44 = vld [vmem:[%s1282_s1 + $0x70] sm:$0xff] }
   0xb   :  { %v223_v41 = vld [vmem:[%s1283_s3 + $0x68] sm:$0xff]  ;;  %v831_v42 = vpack.c.bf16 %v46_v39, %v45_v38  ;;  %v48_v45 = vld [vmem:[%s1282_s1 + $0x78] sm:$0xff]  ;;  %v224_v46 = vld [vmem:[%s1283_s3 + $0x70] sm:$0xff] }
   0xc   :  { %v863_v43 = vpack.c.bf16 %v223_v41, %v222_v40  ;;  %v225_v47 = vld [vmem:[%s1283_s3 + $0x78] sm:$0xff]  ;;  %v835_v48 = vpack.c.bf16 %v48_v45, %v47_v44  ;;  %v18_v50 = vld [vmem:[%s1284_s0 + $0x8] sm:$0xff]  ;;  %v19_v52 = vld [vmem:[%s1284_s0 + $0x10] sm:$0xff] }
   0xd   :  { %814 = vmatpush3.bf16.xpose.msra.mxu0 %v811_v8  ;;  %v867_v49 = vpack.c.bf16 %v225_v47, %v224_v46  ;;  %v195_v51 = vld [vmem:[%s1285_s2 + $0x8] sm:$0xff]  ;;  %v196_v53 = vld [vmem:[%s1285_s2 + $0x10] sm:$0xff]  ;;  %v20_v54 = vld [vmem:[%s1284_s0 + $0x18] sm:$0xff] }
   0xe   :  { %846 = vmatpush3.bf16.xpose.msra.mxu1 %v843_v11  ;;  %816 = vmatprep.subr.bf16.mxu0 %v815_v16  ;;  %v197_v55 = vld [vmem:[%s1285_s2 + $0x18] sm:$0xff]  ;;  %v21_v56 = vld [vmem:[%s1284_s0 + $0x20] sm:$0xff]  ;;  %v22_v58 = vld [vmem:[%s1284_s0 + $0x28] sm:$0xff] }
   0xf   :  { %848 = vmatprep.subr.bf16.mxu1 %v847_v17  ;;  %v198_v57 = vld [vmem:[%s1285_s2 + $0x20] sm:$0xff]  ;;  %v199_v59 = vld [vmem:[%s1285_s2 + $0x28] sm:$0xff]  ;;  %v23_v60 = vld [vmem:[%s1284_s0 + $0x30] sm:$0xff] }
  0x10   :  { %v200_v61 = vld [vmem:[%s1285_s2 + $0x30] sm:$0xff]  ;;  %v24_v62 = vld [vmem:[%s1284_s0 + $0x38] sm:$0xff]  ;;  %v25_v0 = vld [vmem:[%s1284_s0 + $0x40] sm:$0xff] }
  0x11   :  { %v201_v63 = vld [vmem:[%s1285_s2 + $0x38] sm:$0xff]  ;;  %v202_v1 = vld [vmem:[%s1285_s2 + $0x40] sm:$0xff]  ;;  %v26_v2 = vld [vmem:[%s1284_s0 + $0x48] sm:$0xff] }
  0x12   :  { %v203_v3 = vld [vmem:[%s1285_s2 + $0x48] sm:$0xff]  ;;  %v27_v4 = vld [vmem:[%s1284_s0 + $0x50] sm:$0xff]  ;;  %v28_v6 = vld [vmem:[%s1284_s0 + $0x58] sm:$0xff] }
  0x13   :  { %v204_v5 = vld [vmem:[%s1285_s2 + $0x50] sm:$0xff]  ;;  %v205_v7 = vld [vmem:[%s1285_s2 + $0x58] sm:$0xff]  ;;  %v29_v8 = vld [vmem:[%s1284_s0 + $0x60] sm:$0xff] }
  0x14   :  { %v206_v9 = vld [vmem:[%s1285_s2 + $0x60] sm:$0xff]  ;;  %v30_v10 = vld [vmem:[%s1284_s0 + $0x68] sm:$0xff]  ;;  %v31_v12 = vld [vmem:[%s1284_s0 + $0x70] sm:$0xff] }
  0x15   :  { %818 = vmatpush3.bf16.xpose.msra.mxu0 %v815_v16  ;;  %v207_v11 = vld [vmem:[%s1285_s2 + $0x68] sm:$0xff]  ;;  %v208_v13 = vld [vmem:[%s1285_s2 + $0x70] sm:$0xff]  ;;  %v32_v14 = vld [vmem:[%s1284_s0 + $0x78] sm:$0xff] }
  0x16   :  { %850 = vmatpush3.bf16.xpose.msra.mxu1 %v847_v17  ;;  %820 = vmatprep.subr.bf16.mxu0 %v819_v24  ;;  %v209_v15 = vld [vmem:[%s1285_s2 + $0x78] sm:$0xff] }
  0x17   :  { %852 = vmatprep.subr.bf16.mxu1 %v851_v25 }
  0x1d   :  { %822 = vmatpush3.bf16.xpose.msra.mxu0 %v819_v24 }
  0x1e   :  { %854 = vmatpush3.bf16.xpose.msra.mxu1 %v851_v25  ;;  %824 = vmatprep.subr.bf16.mxu0 %v823_v30 }
  0x1f   :  { %856 = vmatprep.subr.bf16.mxu1 %v855_v31 }
  0x25   :  { %826 = vmatpush3.bf16.xpose.msra.mxu0 %v823_v30 }
  0x26   :  { %858 = vmatpush3.bf16.xpose.msra.mxu1 %v855_v31  ;;  %828 = vmatprep.subr.bf16.mxu0 %v827_v36 }
  0x27   :  { %860 = vmatprep.subr.bf16.mxu1 %v859_v37 }
  0x2d   :  { %830 = vmatpush3.bf16.xpose.msra.mxu0 %v827_v36 }
  0x2e   :  { %862 = vmatpush3.bf16.xpose.msra.mxu1 %v859_v37  ;;  %832 = vmatprep.subr.bf16.mxu0 %v831_v42 }
  0x2f   :  { %864 = vmatprep.subr.bf16.mxu1 %v863_v43 }
  0x35   :  { %834 = vmatpush3.bf16.xpose.msra.mxu0 %v831_v42 }
  0x36   :  { %866 = vmatpush3.bf16.xpose.msra.mxu1 %v863_v43  ;;  %836 = vmatprep.subr.bf16.mxu0 %v835_v48 }
  0x37   :  { %868 = vmatprep.subr.bf16.mxu1 %v867_v49 }
  0x3d   :  { %838 = vmatpush3.bf16.xpose.msra.mxu0 %v835_v48 }
  0x3e   :  { %870 = vmatpush3.bf16.xpose.msra.mxu1 %v867_v49 }
  0x44   :  { %728 = vmatmul.mubr.f32.vlgmr.msra.gmra.mrb[0].mxu0 %v18_v50 }
  0x45   :  { %784 = vmatmul.mubr.f32.vlgmr.msra.gmra.mrb[0].mxu1 %v195_v51  ;;  %730 = vmatprep.mubr.f32.mxu0 %v19_v52 }
  0x46   :  { %786 = vmatprep.mubr.f32.mxu1 %v196_v53 }
  0x48   :  { %731 = vmatmul.mubr.f32.gmra.mrb[2].mxu0 %v20_v54 }
  0x49   :  { %787 = vmatmul.mubr.f32.gmra.mrb[2].mxu1 %v197_v55  ;;  %733 = vmatprep.mubr.f32.mxu0 %v21_v56 }
  0x4a   :  { %789 = vmatprep.mubr.f32.mxu1 %v198_v57 }
  0x4c   :  { %734 = vmatmul.mubr.f32.gmra.mrb[4].mxu0 %v22_v58 }
  0x4d   :  { %790 = vmatmul.mubr.f32.gmra.mrb[4].mxu1 %v199_v59  ;;  %736 = vmatprep.mubr.f32.mxu0 %v23_v60 }
  0x4e   :  { %792 = vmatprep.mubr.f32.mxu1 %v200_v61 }
  0x50   :  { %737 = vmatmul.mubr.f32.gmra.mrb[6].mxu0 %v24_v62 }
  0x51   :  { %793 = vmatmul.mubr.f32.gmra.mrb[6].mxu1 %v201_v63  ;;  %739 = vmatprep.mubr.f32.mxu0 %v25_v0 }
  0x52   :  { %795 = vmatprep.mubr.f32.mxu1 %v202_v1 }
  0x54   :  { %740 = vmatmul.mubr.f32.gmra.mrb[8].mxu0 %v26_v2 }
  0x55   :  { %796 = vmatmul.mubr.f32.gmra.mrb[8].mxu1 %v203_v3  ;;  %742 = vmatprep.mubr.f32.mxu0 %v27_v4 }
  0x56   :  { %798 = vmatprep.mubr.f32.mxu1 %v204_v5 }
  0x58   :  { %743 = vmatmul.mubr.f32.gmra.mrb[10].mxu0 %v28_v6 }
  0x59   :  { %799 = vmatmul.mubr.f32.gmra.mrb[10].mxu1 %v205_v7  ;;  %745 = vmatprep.mubr.f32.mxu0 %v29_v8 }
  0x5a   :  { %801 = vmatprep.mubr.f32.mxu1 %v206_v9 }
  0x5c   :  { %746 = vmatmul.mubr.f32.gmra.mrb[12].mxu0 %v30_v10 }
  0x5d   :  { %802 = vmatmul.mubr.f32.gmra.mrb[12].mxu1 %v207_v11  ;;  %748 = vmatprep.mubr.f32.mxu0 %v31_v12 }
  0x5e   :  { %804 = vmatprep.mubr.f32.mxu1 %v208_v13 }
  0x60   :  { %749 = vmatmul.mubr.f32.gmra.mrb[14].mxu0 %v32_v14 }
  0x61   :  { %805 = vmatmul.mubr.f32.gmra.mrb[14].mxu1 %v209_v15 }
 0x117   :  { %v729_v16 = vpop.f32.mrb[0].mxu0 }
 0x118   :  { %v600_v17 = vmul.f32 -1.442695, %v729_v16  ;;  %v785_v18 = vpop.f32.mrb[0].mxu1  ;;  %v115_v19 = vpop.f32.mrb[1].mxu0 }
 0x119   :  { %v616_v20 = vmul.f32 -1.442695, %v785_v18  ;;  %v599_v21 = vmul.f32 -1.442695, %v115_v19  ;;  %v292_v22 = vpop.f32.mrb[1].mxu1 }
 0x11a   :  { %871 = vpow2.f32 %v600_v17  ;;  %v615_v23 = vmul.f32 -1.442695, %v292_v22 }
 0x11b   :  { %873 = vpow2.f32 %v616_v20  ;;  %v732_v24 = vpop.f32.mrb[2].mxu0 }
 0x11c   :  { %875 = vpow2.f32 %v599_v21  ;;  %v602_v25 = vmul.f32 -1.442695, %v732_v24  ;;  %v788_v26 = vpop.f32.mrb[2].mxu1  ;;  %v125_v27 = vpop.f32.mrb[3].mxu0 }
 0x11d   :  { %877 = vpow2.f32 %v615_v23  ;;  %v618_v28 = vmul.f32 -1.442695, %v788_v26  ;;  %v601_v29 = vmul.f32 -1.442695, %v125_v27  ;;  %v302_v30 = vpop.f32.mrb[3].mxu1 }
 0x11e   :  { %879 = vpow2.f32 %v602_v25  ;;  %v617_v31 = vmul.f32 -1.442695, %v302_v30 }
 0x11f   :  { %881 = vpow2.f32 %v618_v28  ;;  %v735_v32 = vpop.f32.mrb[4].mxu0 }
 0x120   :  { %883 = vpow2.f32 %v601_v29  ;;  %v604_v33 = vmul.f32 -1.442695, %v735_v32  ;;  %v791_v34 = vpop.f32.mrb[4].mxu1  ;;  %v135_v35 = vpop.f32.mrb[5].mxu0 }
 0x121   :  { %885 = vpow2.f32 %v617_v31  ;;  %v620_v36 = vmul.f32 -1.442695, %v791_v34  ;;  %v603_v37 = vmul.f32 -1.442695, %v135_v35  ;;  %v312_v38 = vpop.f32.mrb[5].mxu1 }
 0x122   :  { %887 = vpow2.f32 %v604_v33  ;;  %v619_v39 = vmul.f32 -1.442695, %v312_v38 }
 0x123   :  { %889 = vpow2.f32 %v620_v36  ;;  %v738_v40 = vpop.f32.mrb[6].mxu0 }
 0x124   :  { %v872_v41 = vpop.eup %871  ;;  %891 = vpow2.f32 %v603_v37  ;;  %v606_v42 = vmul.f32 -1.442695, %v738_v40  ;;  %v794_v43 = vpop.f32.mrb[6].mxu1 }
 0x125   :  { %v145_v44 = vpop.f32.mrb[7].mxu0  ;;  %v874_v45 = vpop.eup %873  ;;  %v420_v46 = vadd.f32 1.0, %v872_v41  ;;  %893 = vpow2.f32 %v619_v39  ;;  %v622_v15 = vmul.f32 -1.442695, %v794_v43 }
 0x126   :  { %v322_v47 = vpop.f32.mrb[7].mxu1  ;;  %v876_v48 = vpop.eup %875  ;;  %v516_v49 = vadd.f32 1.0, %v874_v45  ;;  %895 = vpow2.f32 %v606_v42  ;;  %v605_v20 = vmul.f32 -1.442695, %v145_v44 }
 0x127   :  { %v878_v50 = vpop.eup %877  ;;  %897 = vrcp.f32 %v420_v46  ;;  %v419_v51 = vadd.f32 1.0, %v876_v48  ;;  %v741_v52 = vpop.f32.mrb[8].mxu0  ;;  %v621_v23 = vmul.f32 -1.442695, %v322_v47 }
 0x128   :  { %v880_v53 = vpop.eup %879  ;;  %899 = vrcp.f32 %v516_v49  ;;  %v515_v54 = vadd.f32 1.0, %v878_v50  ;;  %v797_v55 = vpop.f32.mrb[8].mxu1  ;;  %v608_v26 = vmul.f32 -1.442695, %v741_v52 }
 0x129   :  { %v155_v56 = vpop.f32.mrb[9].mxu0  ;;  %v882_v57 = vpop.eup %881  ;;  %901 = vrcp.f32 %v419_v51  ;;  %v422_v58 = vadd.f32 1.0, %v880_v53  ;;  %v624_v29 = vmul.f32 -1.442695, %v797_v55 }
 0x12a   :  { %v332_v59 = vpop.f32.mrb[9].mxu1  ;;  %v884_v60 = vpop.eup %883  ;;  %903 = vrcp.f32 %v515_v54  ;;  %v518_v61 = vadd.f32 1.0, %v882_v57  ;;  %v607_v34 = vmul.f32 -1.442695, %v155_v56 }
 0x12b   :  { %v886_v62 = vpop.eup %885  ;;  %905 = vrcp.f32 %v422_v58  ;;  %v421_v63 = vadd.f32 1.0, %v884_v60  ;;  %v744_v0 = vpop.f32.mrb[10].mxu0  ;;  %v623_v37 = vmul.f32 -1.442695, %v332_v59 }
 0x12c   :  { %v888_v1 = vpop.eup %887  ;;  %907 = vrcp.f32 %v518_v61  ;;  %v517_v2 = vadd.f32 1.0, %v886_v62  ;;  %v800_v3 = vpop.f32.mrb[10].mxu1  ;;  %v610_v40 = vmul.f32 -1.442695, %v744_v0 }
 0x12d   :  { %v165_v4 = vpop.f32.mrb[11].mxu0  ;;  %v890_v5 = vpop.eup %889  ;;  %909 = vrcp.f32 %v421_v63  ;;  %v424_v6 = vadd.f32 1.0, %v888_v1  ;;  %v626_v42 = vmul.f32 -1.442695, %v800_v3 }
 0x12e   :  { %v342_v7 = vpop.f32.mrb[11].mxu1  ;;  %v892_v8 = vpop.eup %891  ;;  %911 = vrcp.f32 %v517_v2  ;;  %v520_v9 = vadd.f32 1.0, %v890_v5  ;;  %v609_v45 = vmul.f32 -1.442695, %v165_v4 }
 0x12f   :  { %v894_v10 = vpop.eup %893  ;;  %913 = vrcp.f32 %v424_v6  ;;  %v423_v11 = vadd.f32 1.0, %v892_v8  ;;  %v747_v12 = vpop.f32.mrb[12].mxu0  ;;  %v625_v47 = vmul.f32 -1.442695, %v342_v7 }
 0x130   :  { %v896_v13 = vpop.eup %895  ;;  %915 = vrcp.f32 %v520_v9  ;;  %v519_v14 = vadd.f32 1.0, %v894_v10  ;;  %v803_v16 = vpop.f32.mrb[12].mxu1  ;;  %v612_v50 = vmul.f32 -1.442695, %v747_v12 }
 0x131   :  { %v1216_v17 = vpop.f32.mrb[13].mxu0  ;;  %v898_v18 = vpop.eup %897  ;;  %917 = vrcp.f32 %v423_v11  ;;  %v426_v19 = vadd.f32 1.0, %v896_v13  ;;  %v628_v52 = vmul.f32 -1.442695, %v803_v16 }
 0x132   :  { %v1218_v21 = vpop.f32.mrb[13].mxu1  ;;  %v900_v22 = vpop.eup %899  ;;  %919 = vrcp.f32 %v519_v14  ;;  %v611_v16 = vmul.f32 -1.442695, %v1216_v17 }
 0x133   :  { %v902_v24 = vpop.eup %901  ;;  %v564_v25 = vadd.f32 %v900_v22, %v898_v18  ;;  %921 = vrcp.f32 %v426_v19  ;;  %v1220_v27 = vpop.f32.mrb[14].mxu0 }
 0x134   :  { %v904_v28 = vpop.eup %903  ;;  %923 = vpow2.f32 %v622_v15  ;;  %v1222_v30 = vpop.f32.mrb[14].mxu1 }
 0x135   :  { %v1224_v31 = vpop.f32.mrb[15].mxu0  ;;  %v906_v32 = vpop.eup %905  ;;  %580 = vst [vmem:[%s1286_s4 + $0x8] sm:$0xff] %v564_v25  ;;  %v563_v33 = vadd.f32 %v904_v28, %v902_v24  ;;  %925 = vpow2.f32 %v605_v20  ;;  %v627_v20 = vmul.f32 -1.442695, %v1218_v21  ;;  %v614_v24 = vmul.f32 -1.442695, %v1220_v27 }
 0x136   :  { %v1229_v35 = vpop.f32.mrb[15].mxu1  ;;  %v908_v36 = vpop.eup %907  ;;  %927 = vpow2.f32 %v621_v23 }
 0x137   :  { %v910_v38 = vpop.eup %909  ;;  %579 = vst [vmem:[%s1286_s4] sm:$0xff] %v563_v33  ;;  %v566_v39 = vadd.f32 %v908_v36, %v906_v32  ;;  %929 = vpow2.f32 %v608_v26  ;;  %v630_v26 = vmul.f32 -1.442695, %v1222_v30  ;;  %v629_v21 = vmul.f32 -1.442695, %v1229_v35 }
 0x138   :  { %v912_v41 = vpop.eup %911  ;;  %931 = vpow2.f32 %v624_v29  ;;  %v613_v29 = vmul.f32 -1.442695, %v1224_v31 }
 0x139   :  { %v914_v43 = vpop.eup %913  ;;  %582 = vst [vmem:[%s1286_s4 + $0x18] sm:$0xff] %v566_v39  ;;  %v565_v44 = vadd.f32 %v912_v41, %v910_v38  ;;  %933 = vpow2.f32 %v607_v34 }
 0x13a   :  { %v916_v46 = vpop.eup %915  ;;  %935 = vpow2.f32 %v623_v37 }
 0x13b   :  { %v918_v48 = vpop.eup %917  ;;  %581 = vst [vmem:[%s1286_s4 + $0x10] sm:$0xff] %v565_v44  ;;  %v568_v49 = vadd.f32 %v916_v46, %v914_v43  ;;  %937 = vpow2.f32 %v610_v40 }
 0x13c   :  { %v920_v51 = vpop.eup %919  ;;  %939 = vpow2.f32 %v626_v42 }
 0x13d   :  { %v922_v53 = vpop.eup %921  ;;  %584 = vst [vmem:[%s1286_s4 + $0x28] sm:$0xff] %v568_v49  ;;  %v567_v54 = vadd.f32 %v920_v51, %v918_v48  ;;  %941 = vpow2.f32 %v609_v45 }
 0x13e   :  { %v924_v55 = vpop.eup %923  ;;  %943 = vpow2.f32 %v625_v47 }
 0x13f   :  { %v926_v56 = vpop.eup %925  ;;  %583 = vst [vmem:[%s1286_s4 + $0x20] sm:$0xff] %v567_v54  ;;  %v522_v57 = vadd.f32 1.0, %v924_v55  ;;  %945 = vpow2.f32 %v612_v50 }
 0x140   :  { %v928_v58 = vpop.eup %927  ;;  %v425_v59 = vadd.f32 1.0, %v926_v56  ;;  %947 = vpow2.f32 %v628_v52 }
 0x141   :  { %v930_v60 = vpop.eup %929  ;;  %949 = vrcp.f32 %v522_v57  ;;  %v521_v61 = vadd.f32 1.0, %v928_v58 }
 0x142   :  { %v932_v62 = vpop.eup %931  ;;  %951 = vrcp.f32 %v425_v59  ;;  %v428_v63 = vadd.f32 1.0, %v930_v60 }
 0x143   :  { %v934_v0 = vpop.eup %933  ;;  %953 = vrcp.f32 %v521_v61  ;;  %v524_v1 = vadd.f32 1.0, %v932_v62 }
 0x144   :  { %v936_v2 = vpop.eup %935  ;;  %955 = vrcp.f32 %v428_v63  ;;  %v427_v3 = vadd.f32 1.0, %v934_v0 }
 0x145   :  { %v938_v4 = vpop.eup %937  ;;  %957 = vrcp.f32 %v524_v1  ;;  %v523_v5 = vadd.f32 1.0, %v936_v2 }
 0x146   :  { %v940_v6 = vpop.eup %939  ;;  %959 = vrcp.f32 %v427_v3  ;;  %v430_v7 = vadd.f32 1.0, %v938_v4 }
 0x147   :  { %v942_v8 = vpop.eup %941  ;;  %961 = vrcp.f32 %v523_v5  ;;  %v526_v9 = vadd.f32 1.0, %v940_v6 }
 0x148   :  { %v944_v10 = vpop.eup %943  ;;  %963 = vrcp.f32 %v430_v7  ;;  %v429_v11 = vadd.f32 1.0, %v942_v8 }
 0x149   :  { %v946_v12 = vpop.eup %945  ;;  %965 = vrcp.f32 %v526_v9  ;;  %v525_v13 = vadd.f32 1.0, %v944_v10 }
 0x14a   :  { %v948_v14 = vpop.eup %947  ;;  %967 = vrcp.f32 %v429_v11  ;;  %v432_v15 = vadd.f32 1.0, %v946_v12 }
 0x14b   :  { %v950_v18 = vpop.eup %949  ;;  %969 = vrcp.f32 %v525_v13  ;;  %v528_v19 = vadd.f32 1.0, %v948_v14 }
 0x14c   :  { %v952_v22 = vpop.eup %951  ;;  %v570_v23 = vadd.f32 %v950_v18, %v922_v53  ;;  %971 = vrcp.f32 %v432_v15 }
 0x14d   :  { %v954_v25 = vpop.eup %953  ;;  %973 = vrcp.f32 %v528_v19 }
 0x14e   :  { %v956_v28 = vpop.eup %955  ;;  %586 = vst [vmem:[%s1286_s4 + $0x38] sm:$0xff] %v570_v23  ;;  %v569_v17 = vadd.f32 %v954_v25, %v952_v22  ;;  %975 = vpow2.f32 %v611_v16 }
 0x14f   :  { %v958_v32 = vpop.eup %957  ;;  %977 = vpow2.f32 %v627_v20 }
 0x150   :  { %v960_v33 = vpop.eup %959  ;;  %585 = vst [vmem:[%s1286_s4 + $0x30] sm:$0xff] %v569_v17  ;;  %v572_v27 = vadd.f32 %v958_v32, %v956_v28  ;;  %979 = vpow2.f32 %v614_v24 }
 0x151   :  { %v962_v30 = vpop.eup %961  ;;  %981 = vpow2.f32 %v630_v26 }
 0x152   :  { %v964_v34 = vpop.eup %963  ;;  %588 = vst [vmem:[%s1286_s4 + $0x48] sm:$0xff] %v572_v27  ;;  %v571_v36 = vadd.f32 %v962_v30, %v960_v33  ;;  %983 = vpow2.f32 %v613_v29 }
 0x153   :  { %v966_v31 = vpop.eup %965  ;;  %985 = vpow2.f32 %v629_v21 }
 0x154   :  { %v968_v37 = vpop.eup %967  ;;  %587 = vst [vmem:[%s1286_s4 + $0x40] sm:$0xff] %v571_v36  ;;  %v574_v35 = vadd.f32 %v966_v31, %v964_v34 }
 0x155   :  { %v970_v38 = vpop.eup %969 }
 0x156   :  { %v972_v39 = vpop.eup %971  ;;  %590 = vst [vmem:[%s1286_s4 + $0x58] sm:$0xff] %v574_v35  ;;  %v573_v40 = vadd.f32 %v970_v38, %v968_v37 }
 0x157   :  { %v974_v41 = vpop.eup %973 }
 0x158   :  { %v976_v42 = vpop.eup %975  ;;  %589 = vst [vmem:[%s1286_s4 + $0x50] sm:$0xff] %v573_v40  ;;  %v576_v43 = vadd.f32 %v974_v41, %v972_v39 }
 0x159   :  { %v978_v44 = vpop.eup %977  ;;  %v431_v45 = vadd.f32 1.0, %v976_v42 }
 0x15a   :  { %v980_v46 = vpop.eup %979  ;;  %592 = vst [vmem:[%s1286_s4 + $0x68] sm:$0xff] %v576_v43  ;;  %v527_v47 = vadd.f32 1.0, %v978_v44 }
 0x15b   :  { %v982_v48 = vpop.eup %981  ;;  %987 = vrcp.f32 %v431_v45  ;;  %v434_v49 = vadd.f32 1.0, %v980_v46 }
 0x15c   :  { %v984_v50 = vpop.eup %983  ;;  %989 = vrcp.f32 %v527_v47  ;;  %v530_v51 = vadd.f32 1.0, %v982_v48 }
 0x15d   :  { %v986_v52 = vpop.eup %985  ;;  %991 = vrcp.f32 %v434_v49  ;;  %v433_v53 = vadd.f32 1.0, %v984_v50 }
 0x15e   :  { %993 = vrcp.f32 %v530_v51  ;;  %v529_v54 = vadd.f32 1.0, %v986_v52 }
 0x15f   :  { %995 = vrcp.f32 %v433_v53 }
 0x160   :  { %997 = vrcp.f32 %v529_v54 }
 0x165   :  { %v988_v55 = vpop.eup %987 }
 0x166   :  { %v990_v56 = vpop.eup %989 }
 0x167   :  { %v992_v57 = vpop.eup %991  ;;  %v575_v58 = vadd.f32 %v990_v56, %v988_v55 }
 0x168   :  { %v994_v59 = vpop.eup %993 }
 0x169   :  { %v996_v60 = vpop.eup %995  ;;  %591 = vst [vmem:[%s1286_s4 + $0x60] sm:$0xff] %v575_v58  ;;  %v578_v61 = vadd.f32 %v994_v59, %v992_v57 }
 0x16a   :  { %v998_v62 = vpop.eup %997 }
 0x16b   :  { %594 = vst [vmem:[%s1286_s4 + $0x78] sm:$0xff] %v578_v61  ;;  %v577_v63 = vadd.f32 %v998_v62, %v996_v60 }
 0x16d   :  { %593 = vst [vmem:[%s1286_s4 + $0x70] sm:$0xff] %v577_v63 }

// kernel: scmdcl_forward.58
= control target key start
LH: loop header
LB: loop body
LE: loop exit
PB: predicated region body
PF: predicated region fallthrough
CT: control target
= control target key end

     0   :  { %vm317_vm0 = vcmask 130112   ;;  %vm324_vm1 = vcmask 195712   ;;  %vm331_vm2 = vcmask 261312   ;;  %vm338_vm3 = vcmask 326912   ;;  %s2179_s2 = inlined_call_operand.vmem [shape: f32[128,128], index: 2, kind: input, shape index: {}]   ;;  %s2180_s0 = inlined_call_operand.vmem [shape: f32[128,128], index: 0, kind: input, shape index: {}]   ;;  %s2181_s1 = inlined_call_operand.vmem [shape: f32[128,128], index: 1, kind: input, shape index: {}]   ;;  %s2182_s3 = inlined_call_operand.vmem [shape: f32[128,128], index: 3, kind: output, shape index: {0}]   ;;  %s2183_s4 = inlined_call_operand.vmem [shape: f32[128,128], index: 4, kind: output, shape index: {1}]  }
   0x1   :  { %v18_v0 = vld [vmem:[%s2179_s2 + $0x10] sm:$0xff]  ;;  %v19_v1 = vld [vmem:[%s2179_s2 + $0x18] sm:$0xff]  ;;  %v16_v2 = vld [vmem:[%s2179_s2] sm:$0xff]  ;;  %vm345_vm4 = vcmask 392512   ;;  %vm352_vm5 = vcmask 458112   ;;  %vm359_vm6 = vcmask 523712  }
   0x2   :  { %v34_v3 = vmul.f32 %v18_v0, %v18_v0  ;;  %v17_v4 = vld [vmem:[%s2179_s2 + $0x8] sm:$0xff]  ;;  %v32_v5 = vmul.f32 %v16_v2, %v16_v2  ;;  %v1245_v6 = vpack.c.bf16 %v19_v1, %v18_v0  ;;  %v35_v8 = vmul.f32 %v19_v1, %v19_v1  ;;  %v20_v11 = vld [vmem:[%s2179_s2 + $0x20] sm:$0xff]  ;;  %v23_v15 = vld [vmem:[%s2179_s2 + $0x38] sm:$0xff] }
   0x3   :  { %v1241_v7 = vpack.c.bf16 %v17_v4, %v16_v2  ;;  %v33_v9 = vmul.f32 %v17_v4, %v17_v4  ;;  %v21_v10 = vld [vmem:[%s2179_s2 + $0x28] sm:$0xff]  ;;  %v36_v13 = vmul.f32 %v20_v11, %v20_v11  ;;  %v83_v14 = vld [vmem:[%s2180_s0] sm:$0xff]  ;;  %v22_v16 = vld [vmem:[%s2179_s2 + $0x30] sm:$0xff]  ;;  %v39_v19 = vmul.f32 %v23_v15, %v23_v15 }
   0x4   :  { %52 = vadd.xlane.f32.xlu1 %v34_v3  ;;  %48 = vadd.xlane.f32.xlu0 %v32_v5  ;;  %v37_v12 = vmul.f32 %v21_v10, %v21_v10  ;;  %v1249_v17 = vpack.c.bf16 %v21_v10, %v20_v11  ;;  %v1488_v18 = vld [vmem:[%s2181_s1] sm:$0xff]  ;;  %v38_v20 = vmul.f32 %v22_v16, %v22_v16  ;;  %v25_v21 = vld [vmem:[%s2179_s2 + $0x48] sm:$0xff]  ;;  %v27_v25 = vld [vmem:[%s2179_s2 + $0x58] sm:$0xff]  ;;  %vm366_vm7 = vcmask 589312  }
   0x5   :  { %1242 = vmatprep.subr.bf16.mxu0 %v1241_v7  ;;  %1274 = vmatprep.subr.bf16.mxu1 %v1241_v7  ;;  %v24_v22 = vld [vmem:[%s2179_s2 + $0x40] sm:$0xff]  ;;  %v41_v23 = vmul.f32 %v25_v21, %v25_v21  ;;  %v26_v26 = vld [vmem:[%s2179_s2 + $0x50] sm:$0xff]  ;;  %v1253_v27 = vpack.c.bf16 %v23_v15, %v22_v16  ;;  %v43_v28 = vmul.f32 %v27_v25, %v27_v25  ;;  %v29_v30 = vld [vmem:[%s2179_s2 + $0x68] sm:$0xff]  ;;  %vm373_vm8 = vcmask 654912  }
   0x6   :  { %1244 = vmatpush3.bf16.xpose.msra.mxu0 %v1241_v7  ;;  %1276 = vmatpush3.bf16.xpose.msra.mxu1 %v1241_v7  ;;  %v40_v24 = vmul.f32 %v24_v22, %v24_v22  ;;  %v42_v29 = vmul.f32 %v26_v26, %v26_v26  ;;  %v28_v31 = vld [vmem:[%s2179_s2 + $0x60] sm:$0xff]  ;;  %v45_v32 = vmul.f32 %v29_v30, %v29_v30  ;;  %v31_v34 = vld [vmem:[%s2179_s2 + $0x78] sm:$0xff]  ;;  %v30_v35 = vld [vmem:[%s2179_s2 + $0x70] sm:$0xff]  ;;  %vm380_vm9 = vcmask 720512  }
   0x7   :  { %1246 = vmatprep.subr.bf16.mxu0 %v1245_v6  ;;  %1278 = vmatprep.subr.bf16.mxu1 %v1245_v6  ;;  %v44_v33 = vmul.f32 %v28_v31, %v28_v31  ;;  %v1257_v36 = vpack.c.bf16 %v25_v21, %v24_v22  ;;  %v47_v37 = vmul.f32 %v31_v34, %v31_v34  ;;  %v1518_v39 = vld [vmem:[%s2180_s0 + $0x8] sm:$0xff]  ;;  %v1525_v42 = vld [vmem:[%s2180_s0 + $0x18] sm:$0xff]  ;;  %v1530_v43 = vld [vmem:[%s2180_s0 + $0x10] sm:$0xff]  ;;  %vm387_vm10 = vcmask 786112  }
   0x8   :  { %54 = vadd.xlane.f32.xlu1 %v35_v8  ;;  %50 = vadd.xlane.f32.xlu0 %v33_v9  ;;  %v46_v38 = vmul.f32 %v30_v35, %v30_v35  ;;  %v100_v40 = vmul.f32 %v1518_v39, %v1518_v39  ;;  %v99_v41 = vmul.f32 %v83_v14, %v83_v14  ;;  %v1539_v47 = vld [vmem:[%s2180_s0 + $0x28] sm:$0xff]  ;;  %v1544_v48 = vld [vmem:[%s2180_s0 + $0x20] sm:$0xff]  ;;  %v1553_v51 = vld [vmem:[%s2180_s0 + $0x38] sm:$0xff]  ;;  %vm394_vm11 = vcmask 851712  }
   0x9   :  { %1161 = vmatprep.mubr.f32.mxu0 %v83_v14  ;;  %1217 = vmatprep.mubr.f32.mxu1 %v1488_v18  ;;  %v1261_v44 = vpack.c.bf16 %v27_v25, %v26_v26  ;;  %v102_v45 = vmul.f32 %v1525_v42, %v1525_v42  ;;  %v101_v46 = vmul.f32 %v1530_v43, %v1530_v43  ;;  %v1558_v52 = vld [vmem:[%s2180_s0 + $0x30] sm:$0xff]  ;;  %v1567_v56 = vld [vmem:[%s2180_s0 + $0x48] sm:$0xff]  ;;  %v1572_v57 = vld [vmem:[%s2180_s0 + $0x40] sm:$0xff]  ;;  %vm401_vm12 = vcmask 917312  }
   0xa   :  { %v104_v49 = vmul.f32 %v1539_v47, %v1539_v47  ;;  %v103_v50 = vmul.f32 %v1544_v48, %v1544_v48  ;;  %v1265_v53 = vpack.c.bf16 %v29_v30, %v28_v31  ;;  %v106_v54 = vmul.f32 %v1553_v51, %v1553_v51  ;;  %v1581_v60 = vld [vmem:[%s2180_s0 + $0x58] sm:$0xff]  ;;  %v1586_v61 = vld [vmem:[%s2180_s0 + $0x50] sm:$0xff]  ;;  %v1595_v1 = vld [vmem:[%s2180_s0 + $0x68] sm:$0xff] }
   0xb   :  { %v105_v55 = vmul.f32 %v1558_v52, %v1558_v52  ;;  %v108_v58 = vmul.f32 %v1567_v56, %v1567_v56  ;;  %v107_v59 = vmul.f32 %v1572_v57, %v1572_v57  ;;  %v1269_v62 = vpack.c.bf16 %v31_v34, %v30_v35  ;;  %v1600_v2 = vld [vmem:[%s2180_s0 + $0x60] sm:$0xff]  ;;  %v1609_v5 = vld [vmem:[%s2180_s0 + $0x78] sm:$0xff]  ;;  %v641_v9 = vld [vmem:[%s2181_s1 + $0x8] sm:$0xff] }
   0xc   :  { %58 = vadd.xlane.f32.xlu1 %v37_v12  ;;  %56 = vadd.xlane.f32.xlu0 %v36_v13  ;;  %v110_v63 = vmul.f32 %v1581_v60, %v1581_v60  ;;  %v109_v0 = vmul.f32 %v1586_v61, %v1586_v61  ;;  %v112_v3 = vmul.f32 %v1595_v1, %v1595_v1  ;;  %v642_v12 = vld [vmem:[%s2181_s1 + $0x10] sm:$0xff]  ;;  %v643_v13 = vld [vmem:[%s2181_s1 + $0x18] sm:$0xff]  ;;  %v644_v16 = vld [vmem:[%s2181_s1 + $0x20] sm:$0xff]  ;;  %vm408_vm13 = vcmask 982912  }
   0xd   :  { %v111_v4 = vmul.f32 %v1600_v2, %v1600_v2  ;;  %v114_v7 = vmul.f32 %v1609_v5, %v1609_v5  ;;  %v657_v10 = vmul.f32 %v641_v9, %v641_v9  ;;  %v656_v11 = vmul.f32 %v1488_v18, %v1488_v18  ;;  %v647_v21 = vld [vmem:[%s2181_s1 + $0x38] sm:$0xff]  ;;  %v649_v25 = vld [vmem:[%s2181_s1 + $0x48] sm:$0xff] }
   0xe   :  { %1248 = vmatpush3.bf16.xpose.msra.mxu0 %v1245_v6  ;;  %1280 = vmatpush3.bf16.xpose.msra.mxu1 %v1245_v6  ;;  %v1614_v6 = vld [vmem:[%s2180_s0 + $0x70] sm:$0xff]  ;;  %v659_v14 = vmul.f32 %v643_v13, %v643_v13  ;;  %v658_v15 = vmul.f32 %v642_v12, %v642_v12  ;;  %v663_v22 = vmul.f32 %v647_v21, %v647_v21  ;;  %vm415_vm14 = vcmask 1048512  }
   0xf   :  { %1250 = vmatprep.subr.bf16.mxu0 %v1249_v17  ;;  %1282 = vmatprep.subr.bf16.mxu1 %v1249_v17  ;;  %v113_v8 = vmul.f32 %v1614_v6, %v1614_v6  ;;  %v665_v26 = vmul.f32 %v649_v25, %v649_v25 }
  0x10   :  { %62 = vadd.xlane.f32.xlu1 %v39_v19  ;;  %60 = vadd.xlane.f32.xlu0 %v38_v20  ;;  %v660_v19 = vmul.f32 %v644_v16, %v644_v16  ;;  %v646_v20 = vld [vmem:[%s2181_s1 + $0x30] sm:$0xff] }
  0x14   :  { %66 = vadd.xlane.f32.xlu1 %v41_v23  ;;  %64 = vadd.xlane.f32.xlu0 %v40_v24  ;;  %v662_v23 = vmul.f32 %v646_v20, %v646_v20  ;;  %v648_v24 = vld [vmem:[%s2181_s1 + $0x40] sm:$0xff] }
  0x16   :  { %1252 = vmatpush3.bf16.xpose.msra.mxu0 %v1249_v17  ;;  %1284 = vmatpush3.bf16.xpose.msra.mxu1 %v1249_v17  ;;  %v645_v17 = vld [vmem:[%s2181_s1 + $0x28] sm:$0xff] }
  0x17   :  { %1254 = vmatprep.subr.bf16.mxu0 %v1253_v27  ;;  %1286 = vmatprep.subr.bf16.mxu1 %v1253_v27  ;;  %v661_v18 = vmul.f32 %v645_v17, %v645_v17 }
  0x18   :  { %70 = vadd.xlane.f32.xlu1 %v43_v28  ;;  %68 = vadd.xlane.f32.xlu0 %v42_v29  ;;  %v650_v28 = vld [vmem:[%s2181_s1 + $0x50] sm:$0xff]  ;;  %v651_v29 = vld [vmem:[%s2181_s1 + $0x58] sm:$0xff] }
  0x19   :  { %v667_v30 = vmul.f32 %v651_v29, %v651_v29  ;;  %v666_v31 = vmul.f32 %v650_v28, %v650_v28 }
  0x1c   :  { %74 = vadd.xlane.f32.xlu1 %v45_v32  ;;  %72 = vadd.xlane.f32.xlu0 %v44_v33  ;;  %v652_v32 = vld [vmem:[%s2181_s1 + $0x60] sm:$0xff]  ;;  %v653_v33 = vld [vmem:[%s2181_s1 + $0x68] sm:$0xff] }
  0x1d   :  { %v669_v34 = vmul.f32 %v653_v33, %v653_v33  ;;  %v668_v35 = vmul.f32 %v652_v32, %v652_v32 }
  0x1e   :  { %1256 = vmatpush3.bf16.xpose.msra.mxu0 %v1253_v27  ;;  %1288 = vmatpush3.bf16.xpose.msra.mxu1 %v1253_v27  ;;  %v664_v27 = vmul.f32 %v648_v24, %v648_v24 }
  0x1f   :  { %1258 = vmatprep.subr.bf16.mxu0 %v1257_v36  ;;  %1290 = vmatprep.subr.bf16.mxu1 %v1257_v36 }
  0x20   :  { %78 = vadd.xlane.f32.xlu1 %v47_v37  ;;  %76 = vadd.xlane.f32.xlu0 %v46_v38  ;;  %v655_v37 = vld [vmem:[%s2181_s1 + $0x78] sm:$0xff] }
  0x21   :  { %v671_v38 = vmul.f32 %v655_v37, %v655_v37 }
  0x24   :  { %117 = vadd.xlane.f32.xlu1 %v100_v40  ;;  %115 = vadd.xlane.f32.xlu0 %v99_v41 }
  0x26   :  { %1260 = vmatpush3.bf16.xpose.msra.mxu0 %v1257_v36  ;;  %1292 = vmatpush3.bf16.xpose.msra.mxu1 %v1257_v36  ;;  %v654_v36 = vld [vmem:[%s2181_s1 + $0x70] sm:$0xff] }
  0x27   :  { %1262 = vmatprep.subr.bf16.mxu0 %v1261_v44  ;;  %1294 = vmatprep.subr.bf16.mxu1 %v1261_v44 }
  0x28   :  { %121 = vadd.xlane.f32.xlu1 %v102_v45  ;;  %119 = vadd.xlane.f32.xlu0 %v101_v46 }
  0x2c   :  { %125 = vadd.xlane.f32.xlu1 %v104_v49  ;;  %123 = vadd.xlane.f32.xlu0 %v103_v50 }
  0x2e   :  { %1264 = vmatpush3.bf16.xpose.msra.mxu0 %v1261_v44  ;;  %1296 = vmatpush3.bf16.xpose.msra.mxu1 %v1261_v44 }
  0x2f   :  { %1266 = vmatprep.subr.bf16.mxu0 %v1265_v53  ;;  %1298 = vmatprep.subr.bf16.mxu1 %v1265_v53 }
  0x30   :  { %129 = vadd.xlane.f32.xlu1 %v106_v54  ;;  %127 = vadd.xlane.f32.xlu0 %v105_v55 }
  0x34   :  { %133 = vadd.xlane.f32.xlu1 %v108_v58  ;;  %131 = vadd.xlane.f32.xlu0 %v107_v59 }
  0x36   :  { %1268 = vmatpush3.bf16.xpose.msra.mxu0 %v1265_v53  ;;  %1300 = vmatpush3.bf16.xpose.msra.mxu1 %v1265_v53  ;;  %v80_v53 = vlaneseq }
  0x37   :  { %1270 = vmatprep.subr.bf16.mxu0 %v1269_v62  ;;  %1302 = vmatprep.subr.bf16.mxu1 %v1269_v62 }
  0x38   :  { %137 = vadd.xlane.f32.xlu1 %v110_v63  ;;  %135 = vadd.xlane.f32.xlu0 %v109_v0  ;;  %v1702_v59 = vshrl.u32 %v80_v53, 7 }
  0x3c   :  { %141 = vadd.xlane.f32.xlu1 %v112_v3  ;;  %139 = vadd.xlane.f32.xlu0 %v111_v4 }
  0x3e   :  { %1272 = vmatpush3.bf16.xpose.msra.mxu0 %v1269_v62  ;;  %1304 = vmatpush3.bf16.xpose.msra.mxu1 %v1269_v62 }
  0x40   :  { %145 = vadd.xlane.f32.xlu1 %v114_v7  ;;  %143 = vadd.xlane.f32.xlu0 %v113_v8 }
  0x44   :  { %674 = vadd.xlane.f32.xlu1 %v657_v10  ;;  %672 = vadd.xlane.f32.xlu0 %v656_v11 }
  0x45   :  { %1218 = vmatmul.mubr.f32.vlgmr.msra.gmra.mrb[0].mxu1 %v641_v9  ;;  %1162 = vmatmul.mubr.f32.vlgmr.msra.gmra.mrb[0].mxu0 %v1518_v39  ;;  %v670_v39 = vmul.f32 %v654_v36, %v654_v36 }
  0x46   :  { %1164 = vmatprep.mubr.f32.mxu0 %v1530_v43  ;;  %1220 = vmatprep.mubr.f32.mxu1 %v642_v12 }
  0x48   :  { %678 = vadd.xlane.f32.xlu1 %v659_v14  ;;  %676 = vadd.xlane.f32.xlu0 %v658_v15 }
  0x49   :  { %1221 = vmatmul.mubr.f32.gmra.mrb[2].mxu1 %v643_v13  ;;  %1165 = vmatmul.mubr.f32.gmra.mrb[2].mxu0 %v1525_v42 }
  0x4a   :  { %1167 = vmatprep.mubr.f32.mxu0 %v1544_v48  ;;  %1223 = vmatprep.mubr.f32.mxu1 %v644_v16 }
  0x4c   :  { %682 = vadd.xlane.f32.xlu1 %v661_v18  ;;  %680 = vadd.xlane.f32.xlu0 %v660_v19 }
  0x4d   :  { %1224 = vmatmul.mubr.f32.gmra.mrb[4].mxu1 %v645_v17  ;;  %1168 = vmatmul.mubr.f32.gmra.mrb[4].mxu0 %v1539_v47 }
  0x4e   :  { %1170 = vmatprep.mubr.f32.mxu0 %v1558_v52  ;;  %1226 = vmatprep.mubr.f32.mxu1 %v646_v20 }
  0x50   :  { %686 = vadd.xlane.f32.xlu1 %v663_v22  ;;  %684 = vadd.xlane.f32.xlu0 %v662_v23 }
  0x51   :  { %1227 = vmatmul.mubr.f32.gmra.mrb[6].mxu1 %v647_v21  ;;  %1171 = vmatmul.mubr.f32.gmra.mrb[6].mxu0 %v1553_v51 }
  0x52   :  { %1173 = vmatprep.mubr.f32.mxu0 %v1572_v57  ;;  %1229 = vmatprep.mubr.f32.mxu1 %v648_v24 }
  0x54   :  { %690 = vadd.xlane.f32.xlu1 %v665_v26  ;;  %688 = vadd.xlane.f32.xlu0 %v664_v27 }
  0x55   :  { %1230 = vmatmul.mubr.f32.gmra.mrb[8].mxu1 %v649_v25  ;;  %1174 = vmatmul.mubr.f32.gmra.mrb[8].mxu0 %v1567_v56  ;;  %v1696_v56 = vand.u32 127, %v80_v53 }
  0x56   :  { %1176 = vmatprep.mubr.f32.mxu0 %v1586_v61  ;;  %1232 = vmatprep.mubr.f32.mxu1 %v650_v28 }
  0x57   :  { %v319_v61 = vadd.s32 4294967280, %v1696_v56  ;;  %v310_v62 = vsub.s32 %v1696_v56, %v1702_v59  ;;  %v340_v12 = vadd.s32 4294967256, %v1696_v56  ;;  %v347_v16 = vadd.s32 4294967248, %v1696_v56 }
  0x58   :  { %694 = vadd.xlane.f32.xlu1 %v667_v30  ;;  %692 = vadd.xlane.f32.xlu0 %v666_v31  ;;  %v354_v22 = vadd.s32 4294967240, %v1696_v56  ;;  %v361_v26 = vadd.s32 4294967232, %v1696_v56  ;;  %vm82_vm15 = vcmp.lt.s32.totalorder %v1696_v56, 4 }
  0x59   :  { %1233 = vmatmul.mubr.f32.gmra.mrb[10].mxu1 %v651_v29  ;;  %1177 = vmatmul.mubr.f32.gmra.mrb[10].mxu0 %v1581_v60  ;;  %v312_v60 = vadd.s32 4294967288, %v1696_v56  ;;  %v322_v3 = vsub.s32 %v319_v61, %v1702_v59  ;;  %v343_v17 = vsub.s32 %v340_v12, %v1702_v59  ;;  %v350_v23 = vsub.s32 %v347_v16, %v1702_v59 }
  0x5a   :  { %1179 = vmatprep.mubr.f32.mxu0 %v1600_v2  ;;  %1235 = vmatprep.mubr.f32.mxu1 %v652_v32  ;;  %v326_v2 = vadd.s32 4294967272, %v1696_v56  ;;  %v357_v27 = vsub.s32 %v354_v22, %v1702_v59  ;;  %v368_v32 = vadd.s32 4294967224, %v1696_v56 }
  0x5b   :  { %v315_v63 = vsub.s32 %v312_v60, %v1702_v59 }
  0x5c   :  { %698 = vadd.xlane.f32.xlu1 %v669_v34  ;;  %696 = vadd.xlane.f32.xlu0 %v668_v35  ;;  %v329_v7 = vsub.s32 %v326_v2, %v1702_v59 }
  0x5d   :  { %1236 = vmatmul.mubr.f32.gmra.mrb[12].mxu1 %v653_v33  ;;  %1180 = vmatmul.mubr.f32.gmra.mrb[12].mxu0 %v1595_v1  ;;  %v364_v33 = vsub.s32 %v361_v26, %v1702_v59 }
  0x5e   :  { %1182 = vmatprep.mubr.f32.mxu0 %v1614_v6  ;;  %1238 = vmatprep.mubr.f32.mxu1 %v654_v36  ;;  %v333_v6 = vadd.s32 4294967264, %v1696_v56  ;;  %v375_v36 = vadd.s32 4294967216, %v1696_v56 }
  0x60   :  { %702 = vadd.xlane.f32.xlu1 %v671_v38  ;;  %700 = vadd.xlane.f32.xlu0 %v670_v39  ;;  %v336_v13 = vsub.s32 %v333_v6, %v1702_v59 }
  0x61   :  { %1239 = vmatmul.mubr.f32.gmra.mrb[14].mxu1 %v655_v37  ;;  %1183 = vmatmul.mubr.f32.gmra.mrb[14].mxu0 %v1609_v5  ;;  %v371_v37 = vsub.s32 %v368_v32, %v1702_v59 }
  0x91   :  { %v49_v40 = vpop.xlane.xlu0 %48  ;;  %v53_v43 = vpop.xlane.xlu1 %52 }
  0x92   :  { %v311_v4 = vrot.slane %v49_v40, %v310_v62  ;;  %v323_v8 = vrot.slane %v53_v43, %v322_v3  ;;  %v378_v43 = vsub.s32 %v375_v36, %v1702_v59  ;;  %v396_v62 = vadd.s32 4294967192, %v1696_v56 }
  0x93   :  { %v403_v3 = vadd.s32 4294967184, %v1696_v56 }
  0x95   :  { %v51_v41 = vpop.xlane.xlu0 %50  ;;  %v55_v45 = vpop.xlane.xlu1 %54 }
  0x96   :  { %v316_v5 = vrot.slane %v51_v41, %v315_v63  ;;  %v330_v14 = vrot.slane %v55_v45, %v329_v7 }
  0x98   :  { %v318_v11 = vsel %vm317_vm0, %v316_v5, %v311_v4  ;;  %v399_v4 = vsub.s32 %v396_v62, %v1702_v59 }
  0x99   :  { %v57_v42 = vpop.xlane.xlu0 %56  ;;  %v59_v47 = vpop.xlane.xlu1 %58  ;;  %v325_v15 = vsel %vm324_vm1, %v323_v8, %v318_v11  ;;  %v410_v8 = vadd.s32 4294967176, %v1696_v56  ;;  %v406_v11 = vsub.s32 %v403_v3, %v1702_v59 }
  0x9a   :  { %v337_v18 = vrot.slane %v57_v42, %v336_v13  ;;  %v332_v21 = vsel %vm331_vm2, %v330_v14, %v325_v15  ;;  %v344_v24 = vrot.slane %v59_v47, %v343_v17  ;;  %v382_v42 = vadd.s32 4294967208, %v1696_v56 }
  0x9b   :  { %v389_v47 = vadd.s32 4294967200, %v1696_v56  ;;  %v413_v13 = vsub.s32 %v410_v8, %v1702_v59 }
  0x9c   :  { %v339_v25 = vsel %vm338_vm3, %v337_v18, %v332_v21 }
  0x9d   :  { %v61_v44 = vpop.xlane.xlu0 %60  ;;  %v63_v49 = vpop.xlane.xlu1 %62  ;;  %v346_v31 = vsel %vm345_vm4, %v344_v24, %v339_v25  ;;  %v392_v63 = vsub.s32 %v389_v47, %v1702_v59 }
  0x9e   :  { %v351_v28 = vrot.slane %v61_v44, %v350_v23  ;;  %v358_v34 = vrot.slane %v63_v49, %v357_v27  ;;  %v385_v49 = vsub.s32 %v382_v42, %v1702_v59 }
  0xa0   :  { %v353_v35 = vsel %vm352_vm5, %v351_v28, %v346_v31 }
  0xa1   :  { %v1682_v46 = vpop.xlane.xlu0 %64  ;;  %v1688_v51 = vpop.xlane.xlu1 %66  ;;  %v360_v41 = vsel %vm359_vm6, %v358_v34, %v353_v35 }
  0xa2   :  { %v365_v38 = vrot.slane %v1682_v46, %v364_v33  ;;  %v372_v44 = vrot.slane %v1688_v51, %v371_v37 }
  0xa4   :  { %v367_v45 = vsel %vm366_vm7, %v365_v38, %v360_v41 }
  0xa5   :  { %v1684_v48 = vpop.xlane.xlu0 %68  ;;  %v1692_v54 = vpop.xlane.xlu1 %70  ;;  %v374_v61 = vsel %vm373_vm8, %v372_v44, %v367_v45 }
  0xa6   :  { %v379_v46 = vrot.slane %v1684_v48, %v378_v43  ;;  %v386_v51 = vrot.slane %v1692_v54, %v385_v49 }
  0xa8   :  { %v381_v2 = vsel %vm380_vm9, %v379_v46, %v374_v61 }
  0xa9   :  { %v1686_v50 = vpop.xlane.xlu0 %72  ;;  %v1698_v57 = vpop.xlane.xlu1 %74  ;;  %v388_v7 = vsel %vm387_vm10, %v386_v51, %v381_v2 }
  0xaa   :  { %v393_v48 = vrot.slane %v1686_v50, %v392_v63  ;;  %v400_v12 = vrot.slane %v1698_v57, %v399_v4 }
  0xac   :  { %v395_v54 = vsel %vm394_vm11, %v393_v48, %v388_v7 }
  0xad   :  { %v1690_v52 = vpop.xlane.xlu0 %76  ;;  %v1709_v0 = vpop.xlane.xlu1 %78  ;;  %v402_v16 = vsel %vm401_vm12, %v400_v12, %v395_v54 }
  0xae   :  { %v407_v14 = vrot.slane %v1690_v52, %v406_v11  ;;  %v414_v17 = vrot.slane %v1709_v0, %v413_v13 }
  0xb0   :  { %v409_v18 = vsel %vm408_vm13, %v407_v14, %v402_v16 }
  0xb1   :  { %v1694_v55 = vpop.xlane.xlu0 %115  ;;  %v1717_v9 = vpop.xlane.xlu1 %117  ;;  %v1776_v57 = vsel %vm415_vm14, %v414_v17, %v409_v18 }
  0xb2   :  { %v431_v52 = vadd.f32 %v1776_v57, %v1717_v9  ;;  %v430_v0 = vadd.f32 %v1776_v57, %v1694_v55 }
  0xb5   :  { %v1700_v58 = vpop.xlane.xlu0 %119  ;;  %v1725_v19 = vpop.xlane.xlu1 %121 }
  0xb6   :  { %v433_v48 = vadd.f32 %v1776_v57, %v1725_v19 }
  0xb9   :  { %v1711_v1 = vpop.xlane.xlu0 %123  ;;  %v1733_v29 = vpop.xlane.xlu1 %125 }
  0xbd   :  { %v1719_v10 = vpop.xlane.xlu0 %127  ;;  %v1742_v39 = vpop.xlane.xlu1 %129 }
  0xc1   :  { %v1727_v20 = vpop.xlane.xlu0 %131  ;;  %v1752_v53 = vpop.xlane.xlu1 %133 }
  0xc5   :  { %v1735_v30 = vpop.xlane.xlu0 %135  ;;  %v1762_v5 = vpop.xlane.xlu1 %137 }
  0xc9   :  { %v1744_v40 = vpop.xlane.xlu0 %139  ;;  %v1769_v15 = vpop.xlane.xlu1 %141 }
  0xcd   :  { %v1754_v60 = vpop.xlane.xlu0 %143  ;;  %v1772_v21 = vpop.xlane.xlu1 %145 }
  0xd1   :  { %v673_v6 = vpop.xlane.xlu0 %672  ;;  %v675_v28 = vpop.xlane.xlu1 %674 }
  0xd2   :  { %v850_v36 = vadd.f32 %v675_v28, %v1776_v57  ;;  %v849_v44 = vadd.f32 %v673_v6, %v1776_v57  ;;  %v432_v6 = vadd.f32 %v1776_v57, %v1700_v58 }
  0xd5   :  { %v677_v50 = vpop.xlane.xlu0 %676  ;;  %v679_v63 = vpop.xlane.xlu1 %678 }
  0xd6   :  { %v852_v14 = vadd.f32 %v679_v63, %v1776_v57 }
  0xd9   :  { %v1774_v22 = vpop.xlane.xlu0 %680 }
  0xdd   :  { %v1782_v31 = vpop.xlane.xlu0 %684 }
  0xe1   :  { %v1786_v51 = vpop.xlane.xlu0 %688 }
 0x118   :  { %v1163_v23 = vpop.f32.mrb[0].mxu0  ;;  %v1219_v24 = vpop.f32.mrb[0].mxu1 }
 0x119   :  { %v447_v59 = vmul.f32 2.0, %v1163_v23  ;;  %v213_v25 = vpop.f32.mrb[1].mxu0  ;;  %v770_v26 = vpop.f32.mrb[1].mxu1  ;;  %v866_v33 = vmul.f32 2.0, %v1219_v24 }
 0x11a   :  { %v446_v27 = vmul.f32 2.0, %v213_v25  ;;  %v865_v9 = vmul.f32 2.0, %v770_v26 }
 0x11b   :  { %v463_v32 = vsub.f32 %v431_v52, %v447_v59  ;;  %v882_v43 = vsub.f32 %v850_v36, %v866_v33  ;;  %v851_v59 = vadd.f32 %v677_v50, %v1776_v57 }
 0x11c   :  { %v1166_v34 = vpop.f32.mrb[2].mxu0  ;;  %v1222_v35 = vpop.f32.mrb[2].mxu1  ;;  %v462_v37 = vsub.f32 %v430_v0, %v446_v27  ;;  %v881_v61 = vsub.f32 %v849_v44, %v865_v9 }
 0x11d   :  { %v223_v38 = vpop.f32.mrb[3].mxu0  ;;  %v780_v41 = vpop.f32.mrb[3].mxu1  ;;  %v479_v42 = vmax.f32 %v463_v32, 0.0  ;;  %v449_v62 = vmul.f32 2.0, %v1166_v34  ;;  %v898_v3 = vmax.f32 %v882_v43, 0.0  ;;  %v868_v12 = vmul.f32 2.0, %v1222_v35 }
 0x11e   :  { %v478_v55 = vmax.f32 %v462_v37, 0.0  ;;  %v448_v4 = vmul.f32 2.0, %v223_v38  ;;  %v897_v16 = vmax.f32 %v881_v61, 0.0  ;;  %v867_v24 = vmul.f32 2.0, %v780_v41  ;;  %v1806_v32 = vpop.xlane.xlu0 %692 }
 0x11f   :  { %v495_v2 = vadd.f32 1.0, %v479_v42  ;;  %v465_v17 = vsub.f32 %v433_v48, %v449_v62  ;;  %v914_v18 = vadd.f32 1.0, %v898_v3  ;;  %v884_v58 = vsub.f32 %v852_v14, %v868_v12 }
 0x120   :  { %v1169_v45 = vpop.f32.mrb[4].mxu0  ;;  %v1225_v47 = vpop.f32.mrb[4].mxu1  ;;  %v494_v11 = vadd.f32 1.0, %v478_v55  ;;  %v464_v23 = vsub.f32 %v432_v6, %v448_v4  ;;  %v913_v27 = vadd.f32 1.0, %v897_v16  ;;  %v883_v34 = vsub.f32 %v851_v59, %v867_v24 }
 0x121   :  { %v233_v49 = vpop.f32.mrb[5].mxu0  ;;  %v790_v46 = vpop.f32.mrb[5].mxu1  ;;  %1305 = vrcp.f32 %v495_v2  ;;  %v481_v0 = vmax.f32 %v465_v17, 0.0  ;;  %v451_v28 = vmul.f32 2.0, %v1169_v45  ;;  %v435_v35 = vadd.f32 %v1776_v57, %v1733_v29 }
 0x122   :  { %1307 = vrcp.f32 %v494_v11  ;;  %v480_v33 = vmax.f32 %v464_v23, 0.0  ;;  %v450_v36 = vmul.f32 2.0, %v233_v49  ;;  %v434_v38 = vadd.f32 %v1776_v57, %v1711_v1  ;;  %v683_v55 = vpop.xlane.xlu1 %682  ;;  %v1834_v17 = vpop.xlane.xlu0 %696 }
 0x123   :  { %1309 = vrcp.f32 %v914_v18  ;;  %v900_v41 = vmax.f32 %v884_v58, 0.0  ;;  %v497_v43 = vadd.f32 1.0, %v481_v0  ;;  %v467_v44 = vsub.f32 %v435_v35, %v451_v28 }
 0x124   :  { %v1172_v7 = vpop.f32.mrb[6].mxu0  ;;  %v1790_v8 = vpop.f32.mrb[6].mxu1  ;;  %1311 = vrcp.f32 %v913_v27  ;;  %v870_v45 = vmul.f32 2.0, %v1225_v47  ;;  %v496_v61 = vadd.f32 1.0, %v480_v33  ;;  %v899_v29 = vmax.f32 %v883_v34, 0.0 }
 0x125   :  { %v243_v54 = vpop.f32.mrb[7].mxu0  ;;  %v1794_v13 = vpop.f32.mrb[7].mxu1  ;;  %v854_v49 = vadd.f32 %v683_v55, %v1776_v57  ;;  %v466_v62 = vsub.f32 %v434_v38, %v450_v36  ;;  %v869_v63 = vmul.f32 2.0, %v790_v46  ;;  %v853_v4 = vadd.f32 %v1774_v22, %v1776_v57 }
 0x126   :  { %v916_v48 = vadd.f32 1.0, %v900_v41  ;;  %1313 = vrcp.f32 %v497_v43  ;;  %v483_v11 = vmax.f32 %v467_v44, 0.0  ;;  %v453_v14 = vmul.f32 2.0, %v1172_v7 }
 0x127   :  { %v886_v12 = vsub.f32 %v854_v49, %v870_v45  ;;  %v437_v16 = vadd.f32 %v1776_v57, %v1742_v39  ;;  %1315 = vrcp.f32 %v496_v61  ;;  %v915_v18 = vadd.f32 1.0, %v899_v29  ;;  %v701_v49 = vpop.xlane.xlu0 %700 }
 0x128   :  { %v1797_v19 = vpop.f32.mrb[8].mxu0  ;;  %v1799_v52 = vpop.f32.mrb[8].mxu1  ;;  %v482_v22 = vmax.f32 %v466_v62, 0.0  ;;  %v885_v23 = vsub.f32 %v853_v4, %v869_v63  ;;  %v452_v24 = vmul.f32 2.0, %v243_v54  ;;  %v436_v0 = vadd.f32 %v1776_v57, %v1719_v10 }
 0x129   :  { %v1802_v25 = vpop.f32.mrb[9].mxu0  ;;  %v1804_v26 = vpop.f32.mrb[9].mxu1  ;;  %1317 = vrcp.f32 %v916_v48  ;;  %v872_v39 = vmul.f32 2.0, %v1790_v8  ;;  %v499_v34 = vadd.f32 1.0, %v483_v11  ;;  %v902_v35 = vmax.f32 %v886_v12, 0.0 }
 0x12a   :  { %v687_v54 = vpop.xlane.xlu1 %686  ;;  %v469_v36 = vsub.f32 %v437_v16, %v453_v14  ;;  %1319 = vrcp.f32 %v915_v18  ;;  %v871_v10 = vmul.f32 2.0, %v1794_v13  ;;  %v498_v43 = vadd.f32 1.0, %v482_v22 }
 0x12b   :  { %v1306_v1 = vpop.eup %1305  ;;  %v856_v41 = vadd.f32 %v687_v54, %v1776_v57  ;;  %v901_v44 = vmax.f32 %v885_v23, 0.0  ;;  %v468_v45 = vsub.f32 %v436_v0, %v452_v24  ;;  %v855_v61 = vadd.f32 %v1782_v31, %v1776_v57 }
 0x12c   :  { %v1810_v37 = vpop.f32.mrb[10].mxu0  ;;  %v1812_v50 = vpop.f32.mrb[10].mxu1  ;;  %v1838_v59 = vsel %vm82_vm15, %v1306_v1, 0.0  ;;  %1321 = vrcp.f32 %v499_v34  ;;  %v918_v62 = vadd.f32 1.0, %v902_v35  ;;  %v485_v13 = vmax.f32 %v469_v36, 0.0 }
 0x12d   :  { %v1816_v9 = vpop.f32.mrb[11].mxu1  ;;  %v1818_v42 = vpop.f32.mrb[11].mxu0  ;;  %562 = vadd.xlane.f32.xlu1 %v1838_v59  ;;  %v888_v29 = vsub.f32 %v856_v41, %v872_v39  ;;  %v455_v63 = vmul.f32 2.0, %v1797_v19  ;;  %v439_v1 = vadd.f32 %v1776_v57, %v1752_v53  ;;  %v887_v4 = vsub.f32 %v855_v61, %v871_v10 }
 0x12e   :  { %v1308_v46 = vpop.eup %1307  ;;  %1323 = vrcp.f32 %v498_v43  ;;  %v917_v31 = vadd.f32 1.0, %v901_v44  ;;  %v484_v12 = vmax.f32 %v468_v45, 0.0  ;;  %v454_v14 = vmul.f32 2.0, %v1802_v25  ;;  %v691_v22 = vpop.xlane.xlu1 %690 }
 0x12f   :  { %v1310_v7 = vpop.eup %1309  ;;  %v1852_v38 = vsel %vm82_vm15, %v1308_v46, 0.0  ;;  %v438_v19 = vadd.f32 %v1776_v57, %v1727_v20  ;;  %v863_v16 = vadd.f32 %v701_v49, %v1776_v57  ;;  %v904_v53 = vmax.f32 %v888_v29, 0.0 }
 0x130   :  { %v1821_v2 = vpop.f32.mrb[12].mxu0  ;;  %v1823_v3 = vpop.f32.mrb[12].mxu1  ;;  %560 = vadd.xlane.f32.xlu0 %v1852_v38  ;;  %v1859_v55 = vsel %vm82_vm15, %v1310_v7, 0.0  ;;  %1325 = vrcp.f32 %v918_v62  ;;  %v501_v23 = vadd.f32 1.0, %v485_v13  ;;  %v471_v24 = vsub.f32 %v439_v1, %v455_v63 }
 0x131   :  { %v1828_v6 = vpop.f32.mrb[13].mxu1  ;;  %v1830_v47 = vpop.f32.mrb[13].mxu0  ;;  %979 = vadd.xlane.f32.xlu1 %v1859_v55  ;;  %v874_v7 = vmul.f32 2.0, %v1799_v52  ;;  %v858_v39 = vadd.f32 %v691_v22, %v1776_v57  ;;  %v903_v25 = vmax.f32 %v887_v4, 0.0  ;;  %1327 = vrcp.f32 %v917_v31 }
 0x132   :  { %v1312_v8 = vpop.eup %1311  ;;  %v500_v20 = vadd.f32 1.0, %v484_v12  ;;  %v470_v35 = vsub.f32 %v438_v19, %v454_v14  ;;  %v857_v52 = vadd.f32 %v1786_v51, %v1776_v57  ;;  %v920_v41 = vadd.f32 1.0, %v904_v53 }
 0x133   :  { %v1869_v48 = vsel %vm82_vm15, %v1312_v8, 0.0  ;;  %v1314_v11 = vpop.eup %1313  ;;  %1329 = vrcp.f32 %v501_v23  ;;  %v487_v43 = vmax.f32 %v471_v24, 0.0  ;;  %v890_v44 = vsub.f32 %v858_v39, %v874_v7 }
 0x134   :  { %v1840_v58 = vpop.f32.mrb[14].mxu0  ;;  %v1842_v27 = vpop.f32.mrb[14].mxu1  ;;  %977 = vadd.xlane.f32.xlu0 %v1869_v48  ;;  %v1880_v34 = vsel %vm82_vm15, %v1314_v11, 0.0  ;;  %v457_v45 = vmul.f32 2.0, %v1810_v37  ;;  %v919_v61 = vadd.f32 1.0, %v903_v25  ;;  %1331 = vrcp.f32 %v500_v20 }
 0x135   :  { %v840_v28 = vpop.f32.mrb[15].mxu1  ;;  %v1848_v33 = vpop.f32.mrb[15].mxu0  ;;  %566 = vadd.xlane.f32.xlu1 %v1880_v34  ;;  %v486_v62 = vmax.f32 %v470_v35, 0.0  ;;  %v456_v63 = vmul.f32 2.0, %v1818_v42  ;;  %v440_v37 = vadd.f32 %v1776_v57, %v1735_v30  ;;  %1333 = vrcp.f32 %v920_v41 }
 0x136   :  { %v1316_v46 = vpop.eup %1315  ;;  %v879_v18 = vmul.f32 2.0, %v840_v28  ;;  %v873_v28 = vmul.f32 2.0, %v1804_v26  ;;  %v441_v26 = vadd.f32 %v1776_v57, %v1762_v5  ;;  %v876_v5 = vmul.f32 2.0, %v1812_v50  ;;  %v695_v11 = vpop.xlane.xlu1 %694 }
 0x137   :  { %v1318_v0 = vpop.eup %1317  ;;  %v1888_v8 = vsel %vm82_vm15, %v1316_v46, 0.0  ;;  %v503_v31 = vadd.f32 1.0, %v487_v43  ;;  %v906_v12 = vmax.f32 %v890_v44, 0.0  ;;  %v860_v42 = vadd.f32 %v695_v11, %v1776_v57 }
 0x138   :  { %v895_v54 = vsub.f32 %v863_v16, %v879_v18  ;;  %v1320_v36 = vpop.eup %1319  ;;  %564 = vadd.xlane.f32.xlu0 %v1888_v8  ;;  %v1896_v51 = vsel %vm82_vm15, %v1318_v0, 0.0  ;;  %v889_v13 = vsub.f32 %v857_v52, %v873_v28  ;;  %v473_v14 = vsub.f32 %v441_v26, %v457_v45 }
 0x139   :  { %v1322_v49 = vpop.eup %1321  ;;  %983 = vadd.xlane.f32.xlu1 %v1896_v51  ;;  %v1905_v1 = vsel %vm82_vm15, %v1320_v36, 0.0  ;;  %v875_v46 = vmul.f32 2.0, %v1816_v9  ;;  %v502_v19 = vadd.f32 1.0, %v486_v62  ;;  %v472_v53 = vsub.f32 %v440_v37, %v456_v63 }
 0x13a   :  { %v911_v10 = vmax.f32 %v895_v54, 0.0  ;;  %v1324_v4 = vpop.eup %1323  ;;  %v1912_v30 = vsel %vm82_vm15, %v1322_v49, 0.0  ;;  %v905_v16 = vmax.f32 %v889_v13, 0.0  ;;  %v859_v18 = vadd.f32 %v1806_v32, %v1776_v57  ;;  %v699_v41 = vpop.xlane.xlu1 %698 }
 0x13b   :  { %v1326_v50 = vpop.eup %1325  ;;  %v892_v22 = vsub.f32 %v860_v42, %v876_v5  ;;  %v1919_v23 = vsel %vm82_vm15, %v1324_v4, 0.0  ;;  %v922_v24 = vadd.f32 1.0, %v906_v12  ;;  %v489_v7 = vmax.f32 %v473_v14, 0.0 }
 0x13c   :  { %v927_v29 = vadd.f32 1.0, %v911_v10  ;;  %981 = vadd.xlane.f32.xlu0 %v1905_v1  ;;  %v1328_v9 = vpop.eup %1327  ;;  %v459_v0 = vmul.f32 2.0, %v1821_v2  ;;  %v443_v39 = vadd.f32 %v1776_v57, %v1769_v15  ;;  %v891_v25 = vsub.f32 %v859_v18, %v875_v46 }
 0x13d   :  { %570 = vadd.xlane.f32.xlu1 %v1912_v30  ;;  %v1927_v32 = vsel %vm82_vm15, %v1326_v50, 0.0  ;;  %v1330_v54 = vpop.eup %1329  ;;  %v921_v20 = vadd.f32 1.0, %v905_v16  ;;  %v488_v35 = vmax.f32 %v472_v53, 0.0  ;;  %v458_v28 = vmul.f32 2.0, %v1830_v47 }
 0x13e   :  { %1335 = vrcp.f32 %v927_v29  ;;  %v442_v2 = vadd.f32 %v1776_v57, %v1744_v40  ;;  %v908_v36 = vmax.f32 %v892_v22, 0.0  ;;  %v1935_v15 = vsel %vm82_vm15, %v1328_v9, 0.0  ;;  %v1332_v52 = vpop.eup %1331  ;;  %v703_v42 = vpop.xlane.xlu1 %702 }
 0x13f   :  { %1337 = vrcp.f32 %v919_v61  ;;  %v505_v10 = vadd.f32 1.0, %v489_v7  ;;  %v475_v43 = vsub.f32 %v443_v39, %v459_v0  ;;  %v878_v44 = vmul.f32 2.0, %v1823_v3  ;;  %v1334_v47 = vpop.eup %1333 }
 0x140   :  { %1339 = vrcp.f32 %v503_v31  ;;  %568 = vadd.xlane.f32.xlu0 %v1919_v23  ;;  %v862_v45 = vadd.f32 %v699_v41, %v1776_v57  ;;  %v907_v26 = vmax.f32 %v891_v25, 0.0  ;;  %v1942_v40 = vsel %vm82_vm15, %v1330_v54, 0.0 }
 0x141   :  { %1341 = vrcp.f32 %v502_v19  ;;  %987 = vadd.xlane.f32.xlu1 %v1927_v32  ;;  %v504_v29 = vadd.f32 1.0, %v488_v35  ;;  %v877_v49 = vmul.f32 2.0, %v1828_v6  ;;  %v474_v62 = vsub.f32 %v442_v2, %v458_v28 }
 0x142   :  { %1343 = vrcp.f32 %v922_v24  ;;  %v861_v3 = vadd.f32 %v1834_v17, %v1776_v57  ;;  %v924_v13 = vadd.f32 1.0, %v908_v36  ;;  %v1950_v63 = vsel %vm82_vm15, %v1332_v52, 0.0 }
 0x143   :  { %1345 = vrcp.f32 %v921_v20  ;;  %v491_v4 = vmax.f32 %v475_v43, 0.0  ;;  %v894_v11 = vsub.f32 %v862_v45, %v878_v44  ;;  %v461_v6 = vmul.f32 2.0, %v1840_v58 }
 0x144   :  { %985 = vadd.xlane.f32.xlu0 %v1935_v15  ;;  %1347 = vrcp.f32 %v505_v10  ;;  %v445_v17 = vadd.f32 %v1776_v57, %v1772_v21  ;;  %v923_v31 = vadd.f32 1.0, %v907_v26  ;;  %v1962_v12 = vsel %vm82_vm15, %v1334_v47, 0.0 }
 0x145   :  { %574 = vadd.xlane.f32.xlu1 %v1942_v40  ;;  %1349 = vrcp.f32 %v504_v29  ;;  %v893_v46 = vsub.f32 %v861_v3, %v877_v49  ;;  %v490_v50 = vmax.f32 %v474_v62, 0.0  ;;  %v460_v19 = vmul.f32 2.0, %v1848_v33 }
 0x146   :  { %v444_v58 = vadd.f32 %v1776_v57, %v1754_v60  ;;  %1351 = vrcp.f32 %v924_v13  ;;  %v507_v53 = vadd.f32 1.0, %v491_v4  ;;  %v910_v18 = vmax.f32 %v894_v11, 0.0 }
 0x147   :  { %v477_v22 = vsub.f32 %v445_v17, %v461_v6  ;;  %v880_v9 = vmul.f32 2.0, %v1842_v27  ;;  %v864_v33 = vadd.f32 %v703_v42, %v1776_v57  ;;  %1353 = vrcp.f32 %v923_v31 }
 0x148   :  { %v1336_v61 = vpop.eup %1335  ;;  %572 = vadd.xlane.f32.xlu0 %v1950_v63  ;;  %v909_v7 = vmax.f32 %v893_v46, 0.0  ;;  %v506_v0 = vadd.f32 1.0, %v490_v50  ;;  %v476_v39 = vsub.f32 %v444_v58, %v460_v19  ;;  %1355 = vrcp.f32 %v507_v53 }
 0x149   :  { %v1954_v37 = vsel %vm82_vm15, %v1336_v61, 0.0  ;;  %v1338_v5 = vpop.eup %1337  ;;  %991 = vadd.xlane.f32.xlu1 %v1962_v12  ;;  %v926_v54 = vadd.f32 1.0, %v910_v18  ;;  %v493_v20 = vmax.f32 %v477_v22, 0.0  ;;  %v896_v57 = vsub.f32 %v864_v33, %v880_v9 }
 0x14a   :  { %v1340_v14 = vpop.eup %1339  ;;  %v1970_v21 = vsel %vm82_vm15, %v1338_v5, 0.0  ;;  %v925_v2 = vadd.f32 1.0, %v909_v7  ;;  %1357 = vrcp.f32 %v506_v0  ;;  %v492_v36 = vmax.f32 %v476_v39, 0.0 }
 0x14b   :  { %v1342_v16 = vpop.eup %1341  ;;  %v1977_v24 = vsel %vm82_vm15, %v1340_v14, 0.0  ;;  %1359 = vrcp.f32 %v926_v54  ;;  %v509_v10 = vadd.f32 1.0, %v493_v20  ;;  %v912_v43 = vmax.f32 %v896_v57, 0.0 }
 0x14c   :  { %989 = vadd.xlane.f32.xlu0 %v1970_v21  ;;  %v1344_v60 = vpop.eup %1343  ;;  %v1982_v25 = vsel %vm82_vm15, %v1342_v16, 0.0  ;;  %1361 = vrcp.f32 %v925_v2  ;;  %v508_v45 = vadd.f32 1.0, %v492_v36 }
 0x14d   :  { %578 = vadd.xlane.f32.xlu1 %v1977_v24  ;;  %v1346_v27 = vpop.eup %1345  ;;  %v1987_v35 = vsel %vm82_vm15, %v1344_v60, 0.0  ;;  %1363 = vrcp.f32 %v509_v10  ;;  %v928_v29 = vadd.f32 1.0, %v912_v43 }
 0x14e   :  { %v1348_v28 = vpop.eup %1347  ;;  %v1992_v52 = vsel %vm82_vm15, %v1346_v27, 0.0  ;;  %1365 = vrcp.f32 %v508_v45 }
 0x14f   :  { %v1350_v41 = vpop.eup %1349  ;;  %v1997_v47 = vsel %vm82_vm15, %v1348_v28, 0.0  ;;  %1367 = vrcp.f32 %v928_v29 }
 0x150   :  { %576 = vadd.xlane.f32.xlu0 %v1982_v25  ;;  %v1352_v44 = vpop.eup %1351  ;;  %v2002_v26 = vsel %vm82_vm15, %v1350_v41, 0.0 }
 0x151   :  { %995 = vadd.xlane.f32.xlu1 %v1987_v35  ;;  %v1354_v61 = vpop.eup %1353  ;;  %v2007_v49 = vsel %vm82_vm15, %v1352_v44, 0.0 }
 0x152   :  { %v1356_v62 = vpop.eup %1355  ;;  %v2012_v3 = vsel %vm82_vm15, %v1354_v61, 0.0 }
 0x153   :  { %v2017_v5 = vsel %vm82_vm15, %v1356_v62, 0.0 }
 0x154   :  { %993 = vadd.xlane.f32.xlu0 %v1992_v52  ;;  %v1358_v13 = vpop.eup %1357 }
 0x155   :  { %582 = vadd.xlane.f32.xlu1 %v1997_v47  ;;  %v1360_v4 = vpop.eup %1359  ;;  %v2022_v11 = vsel %vm82_vm15, %v1358_v13, 0.0 }
 0x156   :  { %v1362_v6 = vpop.eup %1361  ;;  %v2027_v17 = vsel %vm82_vm15, %v1360_v4, 0.0 }
 0x157   :  { %v1364_v31 = vpop.eup %1363  ;;  %v2032_v14 = vsel %vm82_vm15, %v1362_v6, 0.0 }
 0x158   :  { %580 = vadd.xlane.f32.xlu0 %v2002_v26  ;;  %v1366_v42 = vpop.eup %1365  ;;  %v2037_v46 = vsel %vm82_vm15, %v1364_v31, 0.0 }
 0x159   :  { %999 = vadd.xlane.f32.xlu1 %v2007_v49  ;;  %v1368_v50 = vpop.eup %1367  ;;  %v2042_v19 = vsel %vm82_vm15, %v1366_v42, 0.0 }
 0x15a   :  { %v2047_v58 = vsel %vm82_vm15, %v1368_v50, 0.0 }
 0x15c   :  { %997 = vadd.xlane.f32.xlu0 %v2012_v3 }
 0x15d   :  { %586 = vadd.xlane.f32.xlu1 %v2017_v5 }
 0x160   :  { %584 = vadd.xlane.f32.xlu0 %v2022_v11 }
 0x161   :  { %1003 = vadd.xlane.f32.xlu1 %v2027_v17 }
 0x164   :  { %1001 = vadd.xlane.f32.xlu0 %v2032_v14 }
 0x165   :  { %590 = vadd.xlane.f32.xlu1 %v2037_v46 }
 0x168   :  { %588 = vadd.xlane.f32.xlu0 %v2042_v19 }
 0x169   :  { %1007 = vadd.xlane.f32.xlu1 %v2047_v58 }
 0x16c   :  { %1005 = vadd.xlane.f32.xlu0 %v1954_v37 }
 0x1ba   :  { %v563_v16 = vpop.xlane.xlu1 %562 }
 0x1bb   :  { %1369 = vrcp.f32 %v563_v16 }
 0x1bd   :  { %v561_v53 = vpop.xlane.xlu0 %560 }
 0x1be   :  { %1371 = vrcp.f32 %v561_v53  ;;  %v980_v18 = vpop.xlane.xlu1 %979 }
 0x1bf   :  { %1373 = vrcp.f32 %v980_v18 }
 0x1c1   :  { %v978_v22 = vpop.xlane.xlu0 %977 }
 0x1c2   :  { %1375 = vrcp.f32 %v978_v22  ;;  %v567_v33 = vpop.xlane.xlu1 %566 }
 0x1c3   :  { %1377 = vrcp.f32 %v567_v33 }
 0x1c5   :  { %v1370_v9 = vpop.eup %1369  ;;  %v565_v7 = vpop.xlane.xlu0 %564 }
 0x1c6   :  { %v595_v60 = vmul.f32 %v1370_v9, %v1838_v59  ;;  %1379 = vrcp.f32 %v565_v7  ;;  %v984_v27 = vpop.xlane.xlu1 %983 }
 0x1c7   :  { %1381 = vrcp.f32 %v984_v27 }
 0x1c8   :  { %v1372_v56 = vpop.eup %1371  ;;  %625 = vst [vmem:[%s2182_s3 + $0x8] sm:$0xff] %v595_v60 }
 0x1c9   :  { %v593_v0 = vmul.f32 %v1372_v56, %v1852_v38  ;;  %v1374_v39 = vpop.eup %1373  ;;  %v982_v59 = vpop.xlane.xlu0 %981 }
 0x1ca   :  { %v1012_v54 = vmul.f32 %v1374_v39, %v1859_v55  ;;  %1383 = vrcp.f32 %v982_v59  ;;  %v571_v38 = vpop.xlane.xlu1 %570 }
 0x1cb   :  { %624 = vst [vmem:[%s2182_s3] sm:$0xff] %v593_v0  ;;  %1385 = vrcp.f32 %v571_v38 }
 0x1cc   :  { %v1376_v20 = vpop.eup %1375  ;;  %1042 = vst [vmem:[%s2183_s4 + $0x8] sm:$0xff] %v1012_v54 }
 0x1cd   :  { %v1010_v57 = vmul.f32 %v1376_v20, %v1869_v48  ;;  %v569_v28 = vpop.xlane.xlu0 %568  ;;  %v1378_v2 = vpop.eup %1377 }
 0x1ce   :  { %1387 = vrcp.f32 %v569_v28  ;;  %v599_v55 = vmul.f32 %v1378_v2, %v1880_v34  ;;  %v988_v36 = vpop.xlane.xlu1 %987 }
 0x1cf   :  { %1041 = vst [vmem:[%s2183_s4] sm:$0xff] %v1010_v57  ;;  %1389 = vrcp.f32 %v988_v36 }
 0x1d0   :  { %v1380_v41 = vpop.eup %1379  ;;  %627 = vst [vmem:[%s2182_s3 + $0x18] sm:$0xff] %v599_v55 }
 0x1d1   :  { %v597_v48 = vmul.f32 %v1380_v41, %v1888_v8  ;;  %v986_v10 = vpop.xlane.xlu0 %985  ;;  %v1382_v43 = vpop.eup %1381 }
 0x1d2   :  { %1391 = vrcp.f32 %v986_v10  ;;  %v1016_v44 = vmul.f32 %v1382_v43, %v1896_v51  ;;  %v575_v45 = vpop.xlane.xlu1 %574 }
 0x1d3   :  { %626 = vst [vmem:[%s2182_s3 + $0x10] sm:$0xff] %v597_v48  ;;  %1393 = vrcp.f32 %v575_v45 }
 0x1d4   :  { %v1384_v34 = vpop.eup %1383  ;;  %1044 = vst [vmem:[%s2183_s4 + $0x18] sm:$0xff] %v1016_v44 }
 0x1d5   :  { %v1014_v61 = vmul.f32 %v1384_v34, %v1905_v1  ;;  %v573_v29 = vpop.xlane.xlu0 %572  ;;  %v1386_v8 = vpop.eup %1385 }
 0x1d6   :  { %1395 = vrcp.f32 %v573_v29  ;;  %v603_v62 = vmul.f32 %v1386_v8, %v1912_v30  ;;  %v992_v13 = vpop.xlane.xlu1 %991 }
 0x1d7   :  { %1043 = vst [vmem:[%s2183_s4 + $0x10] sm:$0xff] %v1014_v61  ;;  %1397 = vrcp.f32 %v992_v13 }
 0x1d8   :  { %v1388_v51 = vpop.eup %1387  ;;  %629 = vst [vmem:[%s2182_s3 + $0x28] sm:$0xff] %v603_v62 }
 0x1d9   :  { %v601_v4 = vmul.f32 %v1388_v51, %v1919_v23  ;;  %v990_v6 = vpop.xlane.xlu0 %989  ;;  %v1390_v1 = vpop.eup %1389 }
 0x1da   :  { %1399 = vrcp.f32 %v990_v6  ;;  %v1020_v31 = vmul.f32 %v1390_v1, %v1927_v32  ;;  %v579_v42 = vpop.xlane.xlu1 %578 }
 0x1db   :  { %628 = vst [vmem:[%s2182_s3 + $0x20] sm:$0xff] %v601_v4  ;;  %1401 = vrcp.f32 %v579_v42 }
 0x1dc   :  { %v1392_v30 = vpop.eup %1391  ;;  %1046 = vst [vmem:[%s2183_s4 + $0x28] sm:$0xff] %v1020_v31 }
 0x1dd   :  { %v1018_v50 = vmul.f32 %v1392_v30, %v1935_v15  ;;  %v577_v16 = vpop.xlane.xlu0 %576  ;;  %v1394_v23 = vpop.eup %1393 }
 0x1de   :  { %1403 = vrcp.f32 %v577_v16  ;;  %v607_v53 = vmul.f32 %v1394_v23, %v1942_v40  ;;  %v996_v18 = vpop.xlane.xlu1 %995 }
 0x1df   :  { %1045 = vst [vmem:[%s2183_s4 + $0x20] sm:$0xff] %v1018_v50  ;;  %1405 = vrcp.f32 %v996_v18 }
 0x1e0   :  { %v1396_v32 = vpop.eup %1395  ;;  %631 = vst [vmem:[%s2182_s3 + $0x38] sm:$0xff] %v607_v53 }
 0x1e1   :  { %v605_v22 = vmul.f32 %v1396_v32, %v1950_v63  ;;  %v994_v9 = vpop.xlane.xlu0 %993  ;;  %v1398_v15 = vpop.eup %1397 }
 0x1e2   :  { %1407 = vrcp.f32 %v994_v9  ;;  %v1024_v33 = vmul.f32 %v1398_v15, %v1962_v12  ;;  %v583_v60 = vpop.xlane.xlu1 %582 }
 0x1e3   :  { %630 = vst [vmem:[%s2182_s3 + $0x30] sm:$0xff] %v605_v22  ;;  %1409 = vrcp.f32 %v583_v60 }
 0x1e4   :  { %v1400_v40 = vpop.eup %1399  ;;  %1048 = vst [vmem:[%s2183_s4 + $0x38] sm:$0xff] %v1024_v33 }
 0x1e5   :  { %v1022_v56 = vmul.f32 %v1400_v40, %v1970_v21  ;;  %v581_v7 = vpop.xlane.xlu0 %580  ;;  %v1402_v63 = vpop.eup %1401 }
 0x1e6   :  { %1411 = vrcp.f32 %v581_v7  ;;  %v611_v0 = vmul.f32 %v1402_v63, %v1977_v24  ;;  %v1000_v39 = vpop.xlane.xlu1 %999 }
 0x1e7   :  { %1047 = vst [vmem:[%s2183_s4 + $0x30] sm:$0xff] %v1022_v56  ;;  %1413 = vrcp.f32 %v1000_v39 }
 0x1e8   :  { %v1404_v12 = vpop.eup %1403  ;;  %633 = vst [vmem:[%s2182_s3 + $0x48] sm:$0xff] %v611_v0 }
 0x1e9   :  { %v609_v27 = vmul.f32 %v1404_v12, %v1982_v25  ;;  %v998_v54 = vpop.xlane.xlu0 %997  ;;  %v1406_v21 = vpop.eup %1405 }
 0x1ea   :  { %1415 = vrcp.f32 %v998_v54  ;;  %v1028_v59 = vmul.f32 %v1406_v21, %v1987_v35  ;;  %v587_v20 = vpop.xlane.xlu1 %586 }
 0x1eb   :  { %632 = vst [vmem:[%s2182_s3 + $0x40] sm:$0xff] %v609_v27  ;;  %1417 = vrcp.f32 %v587_v20 }
 0x1ec   :  { %v1408_v24 = vpop.eup %1407  ;;  %1050 = vst [vmem:[%s2183_s4 + $0x48] sm:$0xff] %v1028_v59 }
 0x1ed   :  { %v1026_v57 = vmul.f32 %v1408_v24, %v1992_v52  ;;  %v585_v38 = vpop.xlane.xlu0 %584  ;;  %v1410_v25 = vpop.eup %1409 }
 0x1ee   :  { %1419 = vrcp.f32 %v585_v38  ;;  %v615_v28 = vmul.f32 %v1410_v25, %v1997_v47  ;;  %v1004_v2 = vpop.xlane.xlu1 %1003 }
 0x1ef   :  { %1049 = vst [vmem:[%s2183_s4 + $0x40] sm:$0xff] %v1026_v57  ;;  %1421 = vrcp.f32 %v1004_v2 }
 0x1f0   :  { %v1412_v35 = vpop.eup %1411  ;;  %635 = vst [vmem:[%s2182_s3 + $0x58] sm:$0xff] %v615_v28 }
 0x1f1   :  { %v613_v55 = vmul.f32 %v1412_v35, %v2002_v26  ;;  %v1002_v36 = vpop.xlane.xlu0 %1001  ;;  %v1414_v52 = vpop.eup %1413 }
 0x1f2   :  { %1423 = vrcp.f32 %v1002_v36  ;;  %v1032_v41 = vmul.f32 %v1414_v52, %v2007_v49  ;;  %v591_v48 = vpop.xlane.xlu1 %590 }
 0x1f3   :  { %634 = vst [vmem:[%s2182_s3 + $0x50] sm:$0xff] %v613_v55  ;;  %1425 = vrcp.f32 %v591_v48 }
 0x1f4   :  { %v1416_v47 = vpop.eup %1415  ;;  %1052 = vst [vmem:[%s2183_s4 + $0x58] sm:$0xff] %v1032_v41 }
 0x1f5   :  { %v1030_v10 = vmul.f32 %v1416_v47, %v2012_v3  ;;  %v589_v43 = vpop.xlane.xlu0 %588  ;;  %v1418_v26 = vpop.eup %1417 }
 0x1f6   :  { %1427 = vrcp.f32 %v589_v43  ;;  %v619_v44 = vmul.f32 %v1418_v26, %v2017_v5  ;;  %v1008_v45 = vpop.xlane.xlu1 %1007 }
 0x1f7   :  { %1051 = vst [vmem:[%s2183_s4 + $0x50] sm:$0xff] %v1030_v10  ;;  %1429 = vrcp.f32 %v1008_v45 }
 0x1f8   :  { %v1420_v49 = vpop.eup %1419  ;;  %637 = vst [vmem:[%s2182_s3 + $0x68] sm:$0xff] %v619_v44 }
 0x1f9   :  { %v617_v34 = vmul.f32 %v1420_v49, %v2022_v11  ;;  %v1006_v61 = vpop.xlane.xlu0 %1005  ;;  %v1422_v3 = vpop.eup %1421 }
 0x1fa   :  { %1431 = vrcp.f32 %v1006_v61  ;;  %v1036_v29 = vmul.f32 %v1422_v3, %v2027_v17 }
 0x1fb   :  { %636 = vst [vmem:[%s2182_s3 + $0x60] sm:$0xff] %v617_v34 }
 0x1fc   :  { %v1424_v8 = vpop.eup %1423  ;;  %1054 = vst [vmem:[%s2183_s4 + $0x68] sm:$0xff] %v1036_v29 }
 0x1fd   :  { %v1034_v5 = vmul.f32 %v1424_v8, %v2032_v14  ;;  %v1426_v62 = vpop.eup %1425 }
 0x1fe   :  { %v623_v11 = vmul.f32 %v1426_v62, %v2037_v46 }
 0x1ff   :  { %1053 = vst [vmem:[%s2183_s4 + $0x60] sm:$0xff] %v1034_v5 }
 0x200   :  { %v1428_v13 = vpop.eup %1427  ;;  %639 = vst [vmem:[%s2182_s3 + $0x78] sm:$0xff] %v623_v11 }
 0x201   :  { %v621_v17 = vmul.f32 %v1428_v13, %v2042_v19  ;;  %v1430_v51 = vpop.eup %1429 }
 0x202   :  { %v1040_v14 = vmul.f32 %v1430_v51, %v2047_v58 }
 0x203   :  { %638 = vst [vmem:[%s2182_s3 + $0x70] sm:$0xff] %v621_v17 }
 0x204   :  { %v1432_v4 = vpop.eup %1431  ;;  %1056 = vst [vmem:[%s2183_s4 + $0x78] sm:$0xff] %v1040_v14 }
 0x205   :  { %v1038_v46 = vmul.f32 %v1432_v4, %v1954_v37 }
 0x207   :  { %1055 = vst [vmem:[%s2183_s4 + $0x70] sm:$0xff] %v1038_v46 }

</bundles_post_ra>
